<compile_context>
chip_gen: v6e
topology: v6e:2x2x1
jax: 0.10.0
libtpu: 0.0.40
codegen_flags: <defaults>
</compile_context>

<pallas_src>
import functools
import math

import jax
import jax.numpy as jnp
import numpy as np
from jax.experimental import pallas as pl
from jax.experimental.pallas import tpu as pltpu


# ----------------------------------------------------------------------------
# Fused Pallas kernel
# ----------------------------------------------------------------------------
def _fused_block_kernel(x_ref, wqkv_ref, bqkv_ref, wp_ref, bp_ref,
                        g1_ref, bb1_ref, w1_ref, bm1_ref, w2_ref, bm2_ref,
                        g2_ref, bb2_ref, o_ref, *,
                        windows_per_block, tokens, num_heads, dims_per_head,
                        eps):
    Wb, T, H, D = windows_per_block, tokens, num_heads, dims_per_head

    x = x_ref[...]                                   # (Wb*T, C) float32
    x_bf = x.astype(jnp.bfloat16)

    # ---- fused QKV projection: one MXU matmul for q,k,v of all heads -------
    # (the 1/sqrt(D) score scale is pre-folded into the q columns of wqkv)
    qkv = jnp.dot(x_bf, wqkv_ref[...],
                  preferred_element_type=jnp.float32) + bqkv_ref[...]
    qkv = qkv.reshape(Wb, T, 3 * H * D)              # window-batched view

    # ---- per-head attention, batched over all windows in this block --------
    heads = []
    for h in range(H):                               # static unroll (small H)
        q = qkv[:, :, h * D:(h + 1) * D].astype(jnp.bfloat16)
        k = qkv[:, :, (H + h) * D:(H + h + 1) * D].astype(jnp.bfloat16)
        v = qkv[:, :, (2 * H + h) * D:(2 * H + h + 1) * D].astype(jnp.bfloat16)
        # contract last dims directly -> no explicit k.T (no XLU transpose)
        s = jnp.einsum('wtd,wsd->wts', q, k,
                       preferred_element_type=jnp.float32)
        s = s - jnp.max(s, axis=-1, keepdims=True)
        p = jnp.exp(s)
        # divide -> EUP reciprocal + VPU multiply (f32 softmax math)
        p = p * pl.reciprocal(jnp.sum(p, axis=-1, keepdims=True), approx=True)
        heads.append(jnp.einsum('wts,wsd->wtd', p.astype(jnp.bfloat16), v,
                                preferred_element_type=jnp.float32))
    o_heads = jnp.concatenate(heads, axis=-1).reshape(Wb * T, H * D)

    # ---- single output projection over all heads ----------------------------
    att = jnp.dot(o_heads.astype(jnp.bfloat16), wp_ref[...],
                  preferred_element_type=jnp.float32) + bp_ref[...]

    # ---- Add & LayerNorm 1 (f32 statistics) ---------------------------------
    s1 = x + att
    mu1 = jnp.mean(s1, axis=-1, keepdims=True)
    var1 = jnp.mean(jnp.square(s1 - mu1), axis=-1, keepdims=True)
    x1 = (s1 - mu1) * jax.lax.rsqrt(var1 + eps) * g1_ref[...] + bb1_ref[...]

    # ---- MLP ----------------------------------------------------------------
    h1 = jnp.dot(x1.astype(jnp.bfloat16), w1_ref[...],
                 preferred_element_type=jnp.float32) + bm1_ref[...]
    h1 = jax.nn.gelu(h1, approximate=True)
    m = jnp.dot(h1.astype(jnp.bfloat16), w2_ref[...],
                preferred_element_type=jnp.float32) + bm2_ref[...]

    # ---- Add & LayerNorm 2 (f32 statistics) ---------------------------------
    s2 = x1 + m
    mu2 = jnp.mean(s2, axis=-1, keepdims=True)
    var2 = jnp.mean(jnp.square(s2 - mu2), axis=-1, keepdims=True)
    x2 = (s2 - mu2) * jax.lax.rsqrt(var2 + eps) * g2_ref[...] + bb2_ref[...]

    o_ref[...] = x2.astype(o_ref.dtype)


# ----------------------------------------------------------------------------
# Wrapper
# ----------------------------------------------------------------------------
def _rep_spec(shape):
    """Full-array block that is re-used (resident in VMEM) at every grid step."""
    return pl.BlockSpec(shape, lambda i: (0,) * len(shape))


def _fuse_attn_weights(p, dims_per_head):
    """wq/wk/wv (H,C,D) -> (C, 3*H*D) with 1/sqrt(D) folded into q columns;
    wp (H,D,C) -> (H*D, C)."""
    Hn, C, D = p["wq"].shape
    scale = 1.0 / math.sqrt(dims_per_head)

    def cat_w(w):                                    # (H, C, D) -> (C, H*D)
        return jnp.transpose(w, (1, 0, 2)).reshape(C, Hn * D)

    def cat_b(b):                                    # (H, 1, D) -> (1, H*D)
        return jnp.transpose(b, (1, 0, 2)).reshape(1, Hn * D)

    wqkv = jnp.concatenate([cat_w(p["wq"]) * scale, cat_w(p["wk"]),
                            cat_w(p["wv"])], axis=-1)
    bqkv = jnp.concatenate([cat_b(p["bq"]) * scale, cat_b(p["bk"]),
                            cat_b(p["bv"])], axis=-1)
    wp = p["wp"].reshape(Hn * D, C)
    return wqkv, bqkv, wp


def window_partition(x_bhwc, wh, ww):
    B, H, W, C = x_bhwc.shape
    x = x_bhwc.reshape(B, H // wh, wh, W // ww, ww, C)
    x = jnp.transpose(x, (0, 1, 3, 2, 4, 5))
    return x.reshape(-1, wh * ww, C)


def window_reverse(xw, B, H, W, wh, ww):
    C = xw.shape[-1]
    x = xw.reshape(B, H // wh, W // ww, wh, ww, C)
    x = jnp.transpose(x, (0, 1, 3, 2, 4, 5))
    return x.reshape(B, H, W, C)


def basic_block_forward(x_nchw, params, cfg):
    B, C, H, W = x_nchw.shape
    wh, ww = cfg["window_size"]
    nh, D = cfg["num_heads"], cfg["dims_per_head"]
    T = wh * ww

    x = jnp.transpose(x_nchw, (0, 2, 3, 1))          # NHWC
    xw = window_partition(x, wh, ww)                 # (nW, T, C)
    nW = xw.shape[0]

    # Batch several windows per grid step, but keep >= 2 "parallel" steps so
    # both TensorCores of a v7x chip get work.
    wpb = nW // 2 if (nW % 2 == 0 and nW >= 2) else nW
    rows = wpb * T
    grid = (nW // wpb,)
    x_flat = xw.reshape(nW * T, C)

    wqkv, bqkv, wp = _fuse_attn_weights(params["attn"], D)
    mlp_p = params["mlp"]
    Hd = mlp_p["w1"].shape[1]
    bf = jnp.bfloat16

    kernel = functools.partial(
        _fused_block_kernel, windows_per_block=wpb, tokens=T,
        num_heads=nh, dims_per_head=D, eps=1e-5)

    out_flat = pl.pallas_call(
        kernel,
        out_shape=jax.ShapeDtypeStruct((nW * T, C), x_flat.dtype),
        grid=grid,
        in_specs=[
            pl.BlockSpec((rows, C), lambda i: (i, 0)),   # x tokens
            _rep_spec((C, 3 * nh * D)),                  # fused qkv weight
            _rep_spec((1, 3 * nh * D)),                  # fused qkv bias
            _rep_spec((nh * D, C)),                      # output projection
            _rep_spec((1, C)),                           # projection bias
            _rep_spec((1, C)),                           # ln1 gamma
            _rep_spec((1, C)),                           # ln1 beta
            _rep_spec((C, Hd)),                          # mlp w1
            _rep_spec((1, Hd)),                          # mlp b1
            _rep_spec((Hd, C)),                          # mlp w2
            _rep_spec((1, C)),                           # mlp b2
            _rep_spec((1, C)),                           # ln2 gamma
            _rep_spec((1, C)),                           # ln2 beta
        ],
        out_specs=pl.BlockSpec((rows, C), lambda i: (i, 0)),
        compiler_params=pltpu.CompilerParams(
            dimension_semantics=("parallel",)),
    )(x_flat,
      wqkv.astype(bf), bqkv, wp.astype(bf), params["attn"]["bp"],
      params["ln1_g"], params["ln1_b"],
      mlp_p["w1"].astype(bf), mlp_p["b1"], mlp_p["w2"].astype(bf), mlp_p["b2"],
      params["ln2_g"], params["ln2_b"])

    out = window_reverse(out_flat.reshape(nW, T, C), B, H, W, wh, ww)
    return jnp.transpose(out, (0, 3, 1, 2))          # back to NCHW


# ----------------------------------------------------------------------------
# Pure-JAX reference (correctness check)
# ----------------------------------------------------------------------------
def ref_forward(x_nchw, params, cfg):
    B, C, H, W = x_nchw.shape
    wh, ww = cfg["window_size"]
    D = cfg["dims_per_head"]
    hi = jax.lax.Precision.HIGHEST
    x = jnp.transpose(x_nchw, (0, 2, 3, 1))
    xw = window_partition(x, wh, ww)

    p = params["attn"]
    q = jnp.einsum("ntc,hcd->nhtd", xw, p["wq"], precision=hi) + p["bq"][None]
    k = jnp.einsum("ntc,hcd->nhtd", xw, p["wk"], precision=hi) + p["bk"][None]
    v = jnp.einsum("ntc,hcd->nhtd", xw, p["wv"], precision=hi) + p["bv"][None]
    s = jnp.einsum("nhtd,nhsd->nhts", q, k, precision=hi) / math.sqrt(D)
    a = jax.nn.softmax(s, axis=-1)
    o = jnp.einsum("nhts,nhsd->nhtd", a, v, precision=hi)
    att = jnp.einsum("nhtd,hdc->ntc", o, p["wp"], precision=hi) + p["bp"][None]
    att = window_reverse(att, B, H, W, wh, ww)

    def ln(v_, g, b, eps=1e-5):
        mu = jnp.mean(v_, axis=-1, keepdims=True)
        var = jnp.mean(jnp.square(v_ - mu), axis=-1, keepdims=True)
        return (v_ - mu) * jax.lax.rsqrt(var + eps) * g + b

    x_flat = x.reshape(-1, C)
    x1 = ln(x_flat + att.reshape(-1, C), params["ln1_g"], params["ln1_b"])

    mp = params["mlp"]
    h = jnp.dot(x1, mp["w1"], precision=hi) + mp["b1"]
    h = jax.nn.gelu(h, approximate=True)
    m = jnp.dot(h, mp["w2"], precision=hi) + mp["b2"]
    x2 = ln(x1 + m, params["ln2_g"], params["ln2_b"])
    return jnp.transpose(x2.reshape(B, H, W, C), (0, 3, 1, 2))


# ----------------------------------------------------------------------------
# Deterministic parameter init
# ----------------------------------------------------------------------------
def init_params(key, cfg):
    C = cfg["in_out_dims"]
    Hn = cfg["num_heads"]
    D = cfg["dims_per_head"]
    Hd = cfg["mlp_hidden_dims"]
    ks = jax.random.split(key, 12)
    n = lambda k, s: (0.02 * jax.random.normal(k, s)).astype(jnp.float32)
    zb = lambda s: jnp.zeros(s, jnp.float32)
    qb = cfg["use_qkv_bias"]
    attn = {
        "wq": n(ks[0], (Hn, C, D)),
        "wk": n(ks[1], (Hn, C, D)),
        "wv": n(ks[2], (Hn, C, D)),
        "bq": n(ks[3], (Hn, 1, D)) if qb else zb((Hn, 1, D)),
        "bk": n(ks[4], (Hn, 1, D)) if qb else zb((Hn, 1, D)),
        "bv": n(ks[5], (Hn, 1, D)) if qb else zb((Hn, 1, D)),
        "wp": n(ks[6], (Hn, D, C)),
        "bp": n(ks[7], (1, C)),
    }
    mlp_p = {
        "w1": n(ks[8], (C, Hd)),
        "b1": n(ks[9], (1, Hd)),
        "w2": n(ks[10], (Hd, C)),
        "b2": n(ks[11], (1, C)),
    }
    return {
        "attn": attn,
        "mlp": mlp_p,
        "ln1_g": jnp.ones((1, C), jnp.float32),
        "ln1_b": jnp.zeros((1, C), jnp.float32),
        "ln2_g": jnp.ones((1, C), jnp.float32),
        "ln2_b": jnp.zeros((1, C), jnp.float32),
    }


# ----------------------------------------------------------------------------
if __name__ == "__main__":
    cfg = dict(
        in_out_dims=32,
        num_heads=4,
        dims_per_head=8,
        window_size=(4, 4),
        use_cyclic_shift=False,   # TODO(synk): shifted-window mask not implemented
        use_dual_path=False,
        use_cross_attr=False,
        use_qkv_bias=True,
        attention_drop_ratio=0.0,
        linear_after_att_drop_ratio=0.0,
        mlp_hidden_dims=64,
        mlp_drop_ratio=0.0,
    )

    key = jax.random.PRNGKey(0)
    kx, kp = jax.random.split(key)
    B, C, H, W = 2, cfg["in_out_dims"], 8, 8
    x = jax.random.normal(kx, (B, C, H, W), dtype=jnp.float32)
    params = init_params(kp, cfg)

    out = jax.jit(lambda xx: basic_block_forward(xx, params, cfg))(x)
    out = jax.block_until_ready(out)

    ref = ref_forward(x, params, cfg)
    np.testing.assert_allclose(np.asarray(out), np.asarray(ref),
                               rtol=2e-2, atol=2e-2)
    assert out.shape == (B, C, H, W)
    print("KERNEL_OK")
</pallas_src>

<mosaic_0001>
module attributes {stable_mosaic.version = 11 : i64} {
  func.func @_fused_block_kernel(%arg0: i32, %arg1: memref<64x32xf32, #tpu.memory_space<vmem>>, %arg2: memref<32x96xbf16, #tpu.memory_space<vmem>>, %arg3: memref<1x96xf32, #tpu.memory_space<vmem>>, %arg4: memref<32x32xbf16, #tpu.memory_space<vmem>>, %arg5: memref<1x32xf32, #tpu.memory_space<vmem>>, %arg6: memref<1x32xf32, #tpu.memory_space<vmem>>, %arg7: memref<1x32xf32, #tpu.memory_space<vmem>>, %arg8: memref<32x64xbf16, #tpu.memory_space<vmem>>, %arg9: memref<1x64xf32, #tpu.memory_space<vmem>>, %arg10: memref<64x32xbf16, #tpu.memory_space<vmem>>, %arg11: memref<1x32xf32, #tpu.memory_space<vmem>>, %arg12: memref<1x32xf32, #tpu.memory_space<vmem>>, %arg13: memref<1x32xf32, #tpu.memory_space<vmem>>, %arg14: memref<64x32xf32, #tpu.memory_space<vmem>>) attributes {dimension_semantics = [#tpu.dimension_semantics<parallel>], iteration_bounds = array<i64: 2>, scalar_prefetch = 0 : i64, scratch_operands = 0 : i64, tpu.core_type = #tpu.core_type<tc>, window_params = [{transform_indices = @transform_0, window_bounds = array<i64: 64, 32>}, {pipeline_mode = #tpu.pipeline_mode<synchronous>, transform_indices = @transform_1, window_bounds = array<i64: 32, 96>}, {pipeline_mode = #tpu.pipeline_mode<synchronous>, transform_indices = @transform_2, window_bounds = array<i64: 1, 96>}, {pipeline_mode = #tpu.pipeline_mode<synchronous>, transform_indices = @transform_3, window_bounds = array<i64: 32, 32>}, {pipeline_mode = #tpu.pipeline_mode<synchronous>, transform_indices = @transform_4, window_bounds = array<i64: 1, 32>}, {pipeline_mode = #tpu.pipeline_mode<synchronous>, transform_indices = @transform_5, window_bounds = array<i64: 1, 32>}, {pipeline_mode = #tpu.pipeline_mode<synchronous>, transform_indices = @transform_6, window_bounds = array<i64: 1, 32>}, {pipeline_mode = #tpu.pipeline_mode<synchronous>, transform_indices = @transform_7, window_bounds = array<i64: 32, 64>}, {pipeline_mode = #tpu.pipeline_mode<synchronous>, transform_indices = @transform_8, window_bounds = array<i64: 1, 64>}, {pipeline_mode = #tpu.pipeline_mode<synchronous>, transform_indices = @transform_9, window_bounds = array<i64: 64, 32>}, {pipeline_mode = #tpu.pipeline_mode<synchronous>, transform_indices = @transform_10, window_bounds = array<i64: 1, 32>}, {pipeline_mode = #tpu.pipeline_mode<synchronous>, transform_indices = @transform_11, window_bounds = array<i64: 1, 32>}, {pipeline_mode = #tpu.pipeline_mode<synchronous>, transform_indices = @transform_12, window_bounds = array<i64: 1, 32>}, {transform_indices = @transform_13, window_bounds = array<i64: 64, 32>}]} {
    %c0 = arith.constant 0 : index
    %c0_0 = arith.constant 0 : index
    %0 = vector.load %arg1[%c0, %c0_0] : memref<64x32xf32, #tpu.memory_space<vmem>>, vector<64x32xf32>
    %1 = arith.truncf %0 : vector<64x32xf32> to vector<64x32xbf16>
    %c0_1 = arith.constant 0 : index
    %c0_2 = arith.constant 0 : index
    %2 = vector.load %arg2[%c0_1, %c0_2] : memref<32x96xbf16, #tpu.memory_space<vmem>>, vector<32x96xbf16>
    %cst = arith.constant dense<0.000000e+00> : vector<64x96xf32>
    %3 = tpu.matmul %1, %2, %cst {dimension_numbers = #tpu.dot_dimension_numbers<[1], [0], [0], [1], [0, 0, 1, 1], [], []>} : vector<64x32xbf16>, vector<32x96xbf16>, vector<64x96xf32> -> vector<64x96xf32>
    %c0_3 = arith.constant 0 : index
    %c0_4 = arith.constant 0 : index
    %4 = vector.load %arg3[%c0_3, %c0_4] : memref<1x96xf32, #tpu.memory_space<vmem>>, vector<1x96xf32>
    %5 = vector.broadcast %4 : vector<1x96xf32> to vector<64x96xf32>
    %6 = arith.addf %3, %5 : vector<64x96xf32>
    %7 = vector.shape_cast %6 : vector<64x96xf32> to vector<4x16x96xf32>
    %8 = vector.extract_strided_slice %7 {offsets = [0, 0, 0], sizes = [4, 16, 8], strides = [1, 1, 1]} : vector<4x16x96xf32> to vector<4x16x8xf32>
    %9 = arith.truncf %8 : vector<4x16x8xf32> to vector<4x16x8xbf16>
    %10 = vector.extract_strided_slice %7 {offsets = [0, 0, 32], sizes = [4, 16, 8], strides = [1, 1, 1]} : vector<4x16x96xf32> to vector<4x16x8xf32>
    %11 = arith.truncf %10 : vector<4x16x8xf32> to vector<4x16x8xbf16>
    %12 = vector.extract_strided_slice %7 {offsets = [0, 0, 64], sizes = [4, 16, 8], strides = [1, 1, 1]} : vector<4x16x96xf32> to vector<4x16x8xf32>
    %13 = arith.truncf %12 : vector<4x16x8xf32> to vector<4x16x8xbf16>
    "tpu.trace_start"() <{level = 10 : i32, message = "wtd,wsd->wts"}> : () -> ()
    %cst_5 = arith.constant dense<0.000000e+00> : vector<4x16x16xf32>
    %14 = tpu.matmul %9, %11, %cst_5 {dimension_numbers = #tpu.dot_dimension_numbers<[2], [2], [1], [1], [0, 0, 0, 1, 1, 1], [0], [0]>} : vector<4x16x8xbf16>, vector<4x16x8xbf16>, vector<4x16x16xf32> -> vector<4x16x16xf32>
    "tpu.trace_stop"() : () -> ()
    %cst_6 = arith.constant dense<0xFF800000> : vector<4x16xf32>
    %15 = vector.multi_reduction <maximumf>, %14, %cst_6 [2] : vector<4x16x16xf32> to vector<4x16xf32>
    %16 = vector.shape_cast %15 : vector<4x16xf32> to vector<4x16x1xf32>
    %17 = vector.broadcast %16 : vector<4x16x1xf32> to vector<4x16x16xf32>
    %18 = arith.subf %14, %17 : vector<4x16x16xf32>
    %19 = math.exp %18 : vector<4x16x16xf32>
    %cst_7 = arith.constant dense<0.000000e+00> : vector<4x16xf32>
    %20 = vector.multi_reduction <add>, %19, %cst_7 [2] : vector<4x16x16xf32> to vector<4x16xf32>
    %21 = vector.shape_cast %20 : vector<4x16xf32> to vector<4x16x1xf32>
    %22 = tpu.reciprocal %21 {approx = true} : vector<4x16x1xf32> -> vector<4x16x1xf32>
    %23 = vector.broadcast %22 : vector<4x16x1xf32> to vector<4x16x16xf32>
    %24 = arith.mulf %19, %23 : vector<4x16x16xf32>
    %25 = arith.truncf %24 : vector<4x16x16xf32> to vector<4x16x16xbf16>
    "tpu.trace_start"() <{level = 10 : i32, message = "wts,wsd->wtd"}> : () -> ()
    %cst_8 = arith.constant dense<0.000000e+00> : vector<4x16x8xf32>
    %26 = tpu.matmul %25, %13, %cst_8 {dimension_numbers = #tpu.dot_dimension_numbers<[2], [1], [1], [2], [0, 0, 0, 1, 1, 2], [0], [0]>} : vector<4x16x16xbf16>, vector<4x16x8xbf16>, vector<4x16x8xf32> -> vector<4x16x8xf32>
    "tpu.trace_stop"() : () -> ()
    %27 = vector.extract_strided_slice %7 {offsets = [0, 0, 8], sizes = [4, 16, 8], strides = [1, 1, 1]} : vector<4x16x96xf32> to vector<4x16x8xf32>
    %28 = arith.truncf %27 : vector<4x16x8xf32> to vector<4x16x8xbf16>
    %29 = vector.extract_strided_slice %7 {offsets = [0, 0, 40], sizes = [4, 16, 8], strides = [1, 1, 1]} : vector<4x16x96xf32> to vector<4x16x8xf32>
    %30 = arith.truncf %29 : vector<4x16x8xf32> to vector<4x16x8xbf16>
    %31 = vector.extract_strided_slice %7 {offsets = [0, 0, 72], sizes = [4, 16, 8], strides = [1, 1, 1]} : vector<4x16x96xf32> to vector<4x16x8xf32>
    %32 = arith.truncf %31 : vector<4x16x8xf32> to vector<4x16x8xbf16>
    "tpu.trace_start"() <{level = 10 : i32, message = "wtd,wsd->wts"}> : () -> ()
    %cst_9 = arith.constant dense<0.000000e+00> : vector<4x16x16xf32>
    %33 = tpu.matmul %28, %30, %cst_9 {dimension_numbers = #tpu.dot_dimension_numbers<[2], [2], [1], [1], [0, 0, 0, 1, 1, 1], [0], [0]>} : vector<4x16x8xbf16>, vector<4x16x8xbf16>, vector<4x16x16xf32> -> vector<4x16x16xf32>
    "tpu.trace_stop"() : () -> ()
    %cst_10 = arith.constant dense<0xFF800000> : vector<4x16xf32>
    %34 = vector.multi_reduction <maximumf>, %33, %cst_10 [2] : vector<4x16x16xf32> to vector<4x16xf32>
    %35 = vector.shape_cast %34 : vector<4x16xf32> to vector<4x16x1xf32>
    %36 = vector.broadcast %35 : vector<4x16x1xf32> to vector<4x16x16xf32>
    %37 = arith.subf %33, %36 : vector<4x16x16xf32>
    %38 = math.exp %37 : vector<4x16x16xf32>
    %cst_11 = arith.constant dense<0.000000e+00> : vector<4x16xf32>
    %39 = vector.multi_reduction <add>, %38, %cst_11 [2] : vector<4x16x16xf32> to vector<4x16xf32>
    %40 = vector.shape_cast %39 : vector<4x16xf32> to vector<4x16x1xf32>
    %41 = tpu.reciprocal %40 {approx = true} : vector<4x16x1xf32> -> vector<4x16x1xf32>
    %42 = vector.broadcast %41 : vector<4x16x1xf32> to vector<4x16x16xf32>
    %43 = arith.mulf %38, %42 : vector<4x16x16xf32>
    %44 = arith.truncf %43 : vector<4x16x16xf32> to vector<4x16x16xbf16>
    "tpu.trace_start"() <{level = 10 : i32, message = "wts,wsd->wtd"}> : () -> ()
    %cst_12 = arith.constant dense<0.000000e+00> : vector<4x16x8xf32>
    %45 = tpu.matmul %44, %32, %cst_12 {dimension_numbers = #tpu.dot_dimension_numbers<[2], [1], [1], [2], [0, 0, 0, 1, 1, 2], [0], [0]>} : vector<4x16x16xbf16>, vector<4x16x8xbf16>, vector<4x16x8xf32> -> vector<4x16x8xf32>
    "tpu.trace_stop"() : () -> ()
    %46 = vector.extract_strided_slice %7 {offsets = [0, 0, 16], sizes = [4, 16, 8], strides = [1, 1, 1]} : vector<4x16x96xf32> to vector<4x16x8xf32>
    %47 = arith.truncf %46 : vector<4x16x8xf32> to vector<4x16x8xbf16>
    %48 = vector.extract_strided_slice %7 {offsets = [0, 0, 48], sizes = [4, 16, 8], strides = [1, 1, 1]} : vector<4x16x96xf32> to vector<4x16x8xf32>
    %49 = arith.truncf %48 : vector<4x16x8xf32> to vector<4x16x8xbf16>
    %50 = vector.extract_strided_slice %7 {offsets = [0, 0, 80], sizes = [4, 16, 8], strides = [1, 1, 1]} : vector<4x16x96xf32> to vector<4x16x8xf32>
    %51 = arith.truncf %50 : vector<4x16x8xf32> to vector<4x16x8xbf16>
    "tpu.trace_start"() <{level = 10 : i32, message = "wtd,wsd->wts"}> : () -> ()
    %cst_13 = arith.constant dense<0.000000e+00> : vector<4x16x16xf32>
    %52 = tpu.matmul %47, %49, %cst_13 {dimension_numbers = #tpu.dot_dimension_numbers<[2], [2], [1], [1], [0, 0, 0, 1, 1, 1], [0], [0]>} : vector<4x16x8xbf16>, vector<4x16x8xbf16>, vector<4x16x16xf32> -> vector<4x16x16xf32>
    "tpu.trace_stop"() : () -> ()
    %cst_14 = arith.constant dense<0xFF800000> : vector<4x16xf32>
    %53 = vector.multi_reduction <maximumf>, %52, %cst_14 [2] : vector<4x16x16xf32> to vector<4x16xf32>
    %54 = vector.shape_cast %53 : vector<4x16xf32> to vector<4x16x1xf32>
    %55 = vector.broadcast %54 : vector<4x16x1xf32> to vector<4x16x16xf32>
    %56 = arith.subf %52, %55 : vector<4x16x16xf32>
    %57 = math.exp %56 : vector<4x16x16xf32>
    %cst_15 = arith.constant dense<0.000000e+00> : vector<4x16xf32>
    %58 = vector.multi_reduction <add>, %57, %cst_15 [2] : vector<4x16x16xf32> to vector<4x16xf32>
    %59 = vector.shape_cast %58 : vector<4x16xf32> to vector<4x16x1xf32>
    %60 = tpu.reciprocal %59 {approx = true} : vector<4x16x1xf32> -> vector<4x16x1xf32>
    %61 = vector.broadcast %60 : vector<4x16x1xf32> to vector<4x16x16xf32>
    %62 = arith.mulf %57, %61 : vector<4x16x16xf32>
    %63 = arith.truncf %62 : vector<4x16x16xf32> to vector<4x16x16xbf16>
    "tpu.trace_start"() <{level = 10 : i32, message = "wts,wsd->wtd"}> : () -> ()
    %cst_16 = arith.constant dense<0.000000e+00> : vector<4x16x8xf32>
    %64 = tpu.matmul %63, %51, %cst_16 {dimension_numbers = #tpu.dot_dimension_numbers<[2], [1], [1], [2], [0, 0, 0, 1, 1, 2], [0], [0]>} : vector<4x16x16xbf16>, vector<4x16x8xbf16>, vector<4x16x8xf32> -> vector<4x16x8xf32>
    "tpu.trace_stop"() : () -> ()
    %65 = vector.extract_strided_slice %7 {offsets = [0, 0, 24], sizes = [4, 16, 8], strides = [1, 1, 1]} : vector<4x16x96xf32> to vector<4x16x8xf32>
    %66 = arith.truncf %65 : vector<4x16x8xf32> to vector<4x16x8xbf16>
    %67 = vector.extract_strided_slice %7 {offsets = [0, 0, 56], sizes = [4, 16, 8], strides = [1, 1, 1]} : vector<4x16x96xf32> to vector<4x16x8xf32>
    %68 = arith.truncf %67 : vector<4x16x8xf32> to vector<4x16x8xbf16>
    %69 = vector.extract_strided_slice %7 {offsets = [0, 0, 88], sizes = [4, 16, 8], strides = [1, 1, 1]} : vector<4x16x96xf32> to vector<4x16x8xf32>
    %70 = arith.truncf %69 : vector<4x16x8xf32> to vector<4x16x8xbf16>
    "tpu.trace_start"() <{level = 10 : i32, message = "wtd,wsd->wts"}> : () -> ()
    %cst_17 = arith.constant dense<0.000000e+00> : vector<4x16x16xf32>
    %71 = tpu.matmul %66, %68, %cst_17 {dimension_numbers = #tpu.dot_dimension_numbers<[2], [2], [1], [1], [0, 0, 0, 1, 1, 1], [0], [0]>} : vector<4x16x8xbf16>, vector<4x16x8xbf16>, vector<4x16x16xf32> -> vector<4x16x16xf32>
    "tpu.trace_stop"() : () -> ()
    %cst_18 = arith.constant dense<0xFF800000> : vector<4x16xf32>
    %72 = vector.multi_reduction <maximumf>, %71, %cst_18 [2] : vector<4x16x16xf32> to vector<4x16xf32>
    %73 = vector.shape_cast %72 : vector<4x16xf32> to vector<4x16x1xf32>
    %74 = vector.broadcast %73 : vector<4x16x1xf32> to vector<4x16x16xf32>
    %75 = arith.subf %71, %74 : vector<4x16x16xf32>
    %76 = math.exp %75 : vector<4x16x16xf32>
    %cst_19 = arith.constant dense<0.000000e+00> : vector<4x16xf32>
    %77 = vector.multi_reduction <add>, %76, %cst_19 [2] : vector<4x16x16xf32> to vector<4x16xf32>
    %78 = vector.shape_cast %77 : vector<4x16xf32> to vector<4x16x1xf32>
    %79 = tpu.reciprocal %78 {approx = true} : vector<4x16x1xf32> -> vector<4x16x1xf32>
    %80 = vector.broadcast %79 : vector<4x16x1xf32> to vector<4x16x16xf32>
    %81 = arith.mulf %76, %80 : vector<4x16x16xf32>
    %82 = arith.truncf %81 : vector<4x16x16xf32> to vector<4x16x16xbf16>
    "tpu.trace_start"() <{level = 10 : i32, message = "wts,wsd->wtd"}> : () -> ()
    %cst_20 = arith.constant dense<0.000000e+00> : vector<4x16x8xf32>
    %83 = tpu.matmul %82, %70, %cst_20 {dimension_numbers = #tpu.dot_dimension_numbers<[2], [1], [1], [2], [0, 0, 0, 1, 1, 2], [0], [0]>} : vector<4x16x16xbf16>, vector<4x16x8xbf16>, vector<4x16x8xf32> -> vector<4x16x8xf32>
    "tpu.trace_stop"() : () -> ()
    %84 = tpu.concatenate %26, %45, %64, %83 in 2 : vector<4x16x8xf32>, vector<4x16x8xf32>, vector<4x16x8xf32>, vector<4x16x8xf32> -> vector<4x16x32xf32>
    %85 = vector.shape_cast %84 : vector<4x16x32xf32> to vector<64x32xf32>
    %86 = arith.truncf %85 : vector<64x32xf32> to vector<64x32xbf16>
    %c0_21 = arith.constant 0 : index
    %c0_22 = arith.constant 0 : index
    %87 = vector.load %arg4[%c0_21, %c0_22] : memref<32x32xbf16, #tpu.memory_space<vmem>>, vector<32x32xbf16>
    %cst_23 = arith.constant dense<0.000000e+00> : vector<64x32xf32>
    %88 = tpu.matmul %86, %87, %cst_23 {dimension_numbers = #tpu.dot_dimension_numbers<[1], [0], [0], [1], [0, 0, 1, 1], [], []>} : vector<64x32xbf16>, vector<32x32xbf16>, vector<64x32xf32> -> vector<64x32xf32>
    %c0_24 = arith.constant 0 : index
    %c0_25 = arith.constant 0 : index
    %89 = vector.load %arg5[%c0_24, %c0_25] : memref<1x32xf32, #tpu.memory_space<vmem>>, vector<1x32xf32>
    %90 = vector.broadcast %89 : vector<1x32xf32> to vector<64x32xf32>
    %91 = arith.addf %88, %90 : vector<64x32xf32>
    %92 = arith.addf %0, %91 : vector<64x32xf32>
    %cst_26 = arith.constant dense<0.000000e+00> : vector<64xf32>
    %93 = vector.multi_reduction <add>, %92, %cst_26 [1] : vector<64x32xf32> to vector<64xf32>
    %94 = vector.shape_cast %93 : vector<64xf32> to vector<64x1xf32>
    %cst_27 = arith.constant 3.200000e+01 : f32
    %95 = vector.broadcast %cst_27 : f32 to vector<64x1xf32>
    %96 = arith.divf %94, %95 : vector<64x1xf32>
    %97 = vector.broadcast %96 : vector<64x1xf32> to vector<64x32xf32>
    %98 = arith.subf %92, %97 : vector<64x32xf32>
    %99 = arith.mulf %98, %98 : vector<64x32xf32>
    %cst_28 = arith.constant dense<0.000000e+00> : vector<64xf32>
    %100 = vector.multi_reduction <add>, %99, %cst_28 [1] : vector<64x32xf32> to vector<64xf32>
    %101 = vector.shape_cast %100 : vector<64xf32> to vector<64x1xf32>
    %cst_29 = arith.constant 3.200000e+01 : f32
    %102 = vector.broadcast %cst_29 : f32 to vector<64x1xf32>
    %103 = arith.divf %101, %102 : vector<64x1xf32>
    %104 = vector.broadcast %96 : vector<64x1xf32> to vector<64x32xf32>
    %105 = arith.subf %92, %104 : vector<64x32xf32>
    %cst_30 = arith.constant 9.99999974E-6 : f32
    %106 = vector.broadcast %cst_30 : f32 to vector<64x1xf32>
    %107 = arith.addf %103, %106 : vector<64x1xf32>
    %108 = math.rsqrt %107 : vector<64x1xf32>
    %109 = vector.broadcast %108 : vector<64x1xf32> to vector<64x32xf32>
    %110 = arith.mulf %105, %109 : vector<64x32xf32>
    %c0_31 = arith.constant 0 : index
    %c0_32 = arith.constant 0 : index
    %111 = vector.load %arg6[%c0_31, %c0_32] : memref<1x32xf32, #tpu.memory_space<vmem>>, vector<1x32xf32>
    %112 = vector.broadcast %111 : vector<1x32xf32> to vector<64x32xf32>
    %113 = arith.mulf %110, %112 : vector<64x32xf32>
    %c0_33 = arith.constant 0 : index
    %c0_34 = arith.constant 0 : index
    %114 = vector.load %arg7[%c0_33, %c0_34] : memref<1x32xf32, #tpu.memory_space<vmem>>, vector<1x32xf32>
    %115 = vector.broadcast %114 : vector<1x32xf32> to vector<64x32xf32>
    %116 = arith.addf %113, %115 : vector<64x32xf32>
    %117 = arith.truncf %116 : vector<64x32xf32> to vector<64x32xbf16>
    %c0_35 = arith.constant 0 : index
    %c0_36 = arith.constant 0 : index
    %118 = vector.load %arg8[%c0_35, %c0_36] : memref<32x64xbf16, #tpu.memory_space<vmem>>, vector<32x64xbf16>
    %cst_37 = arith.constant dense<0.000000e+00> : vector<64x64xf32>
    %119 = tpu.matmul %117, %118, %cst_37 {dimension_numbers = #tpu.dot_dimension_numbers<[1], [0], [0], [1], [0, 0, 1, 1], [], []>} : vector<64x32xbf16>, vector<32x64xbf16>, vector<64x64xf32> -> vector<64x64xf32>
    %c0_38 = arith.constant 0 : index
    %c0_39 = arith.constant 0 : index
    %120 = vector.load %arg9[%c0_38, %c0_39] : memref<1x64xf32, #tpu.memory_space<vmem>>, vector<1x64xf32>
    %121 = vector.broadcast %120 : vector<1x64xf32> to vector<64x64xf32>
    %122 = arith.addf %119, %121 : vector<64x64xf32>
    %123 = arith.mulf %122, %122 : vector<64x64xf32>
    %124 = arith.mulf %122, %123 : vector<64x64xf32>
    %cst_40 = arith.constant 4.471500e-02 : f32
    %125 = vector.broadcast %cst_40 : f32 to vector<64x64xf32>
    %126 = arith.mulf %125, %124 : vector<64x64xf32>
    %127 = arith.addf %122, %126 : vector<64x64xf32>
    %cst_41 = arith.constant 0.797884583 : f32
    %128 = vector.broadcast %cst_41 : f32 to vector<64x64xf32>
    %129 = arith.mulf %128, %127 : vector<64x64xf32>
    %130 = math.tanh %129 : vector<64x64xf32>
    %cst_42 = arith.constant 1.000000e+00 : f32
    %131 = vector.broadcast %cst_42 : f32 to vector<64x64xf32>
    %132 = arith.addf %131, %130 : vector<64x64xf32>
    %cst_43 = arith.constant 5.000000e-01 : f32
    %133 = vector.broadcast %cst_43 : f32 to vector<64x64xf32>
    %134 = arith.mulf %133, %132 : vector<64x64xf32>
    %135 = arith.mulf %122, %134 : vector<64x64xf32>
    %136 = arith.truncf %135 : vector<64x64xf32> to vector<64x64xbf16>
    %c0_44 = arith.constant 0 : index
    %c0_45 = arith.constant 0 : index
    %137 = vector.load %arg10[%c0_44, %c0_45] : memref<64x32xbf16, #tpu.memory_space<vmem>>, vector<64x32xbf16>
    %cst_46 = arith.constant dense<0.000000e+00> : vector<64x32xf32>
    %138 = tpu.matmul %136, %137, %cst_46 {dimension_numbers = #tpu.dot_dimension_numbers<[1], [0], [0], [1], [0, 0, 1, 1], [], []>} : vector<64x64xbf16>, vector<64x32xbf16>, vector<64x32xf32> -> vector<64x32xf32>
    %c0_47 = arith.constant 0 : index
    %c0_48 = arith.constant 0 : index
    %139 = vector.load %arg11[%c0_47, %c0_48] : memref<1x32xf32, #tpu.memory_space<vmem>>, vector<1x32xf32>
    %140 = vector.broadcast %139 : vector<1x32xf32> to vector<64x32xf32>
    %141 = arith.addf %138, %140 : vector<64x32xf32>
    %142 = arith.addf %116, %141 : vector<64x32xf32>
    %cst_49 = arith.constant dense<0.000000e+00> : vector<64xf32>
    %143 = vector.multi_reduction <add>, %142, %cst_49 [1] : vector<64x32xf32> to vector<64xf32>
    %144 = vector.shape_cast %143 : vector<64xf32> to vector<64x1xf32>
    %cst_50 = arith.constant 3.200000e+01 : f32
    %145 = vector.broadcast %cst_50 : f32 to vector<64x1xf32>
    %146 = arith.divf %144, %145 : vector<64x1xf32>
    %147 = vector.broadcast %146 : vector<64x1xf32> to vector<64x32xf32>
    %148 = arith.subf %142, %147 : vector<64x32xf32>
    %149 = arith.mulf %148, %148 : vector<64x32xf32>
    %cst_51 = arith.constant dense<0.000000e+00> : vector<64xf32>
    %150 = vector.multi_reduction <add>, %149, %cst_51 [1] : vector<64x32xf32> to vector<64xf32>
    %151 = vector.shape_cast %150 : vector<64xf32> to vector<64x1xf32>
    %cst_52 = arith.constant 3.200000e+01 : f32
    %152 = vector.broadcast %cst_52 : f32 to vector<64x1xf32>
    %153 = arith.divf %151, %152 : vector<64x1xf32>
    %154 = vector.broadcast %146 : vector<64x1xf32> to vector<64x32xf32>
    %155 = arith.subf %142, %154 : vector<64x32xf32>
    %cst_53 = arith.constant 9.99999974E-6 : f32
    %156 = vector.broadcast %cst_53 : f32 to vector<64x1xf32>
    %157 = arith.addf %153, %156 : vector<64x1xf32>
    %158 = math.rsqrt %157 : vector<64x1xf32>
    %159 = vector.broadcast %158 : vector<64x1xf32> to vector<64x32xf32>
    %160 = arith.mulf %155, %159 : vector<64x32xf32>
    %c0_54 = arith.constant 0 : index
    %c0_55 = arith.constant 0 : index
    %161 = vector.load %arg12[%c0_54, %c0_55] : memref<1x32xf32, #tpu.memory_space<vmem>>, vector<1x32xf32>
    %162 = vector.broadcast %161 : vector<1x32xf32> to vector<64x32xf32>
    %163 = arith.mulf %160, %162 : vector<64x32xf32>
    %c0_56 = arith.constant 0 : index
    %c0_57 = arith.constant 0 : index
    %164 = vector.load %arg13[%c0_56, %c0_57] : memref<1x32xf32, #tpu.memory_space<vmem>>, vector<1x32xf32>
    %165 = vector.broadcast %164 : vector<1x32xf32> to vector<64x32xf32>
    %166 = arith.addf %163, %165 : vector<64x32xf32>
    %c0_58 = arith.constant 0 : index
    %c0_59 = arith.constant 0 : index
    %167 = vector.load %arg14[%c0_58, %c0_59] : memref<64x32xf32, #tpu.memory_space<vmem>>, vector<64x32xf32>
    tpu.vector_store %arg14[%c0_58, %c0_59], %166 {strides = array<i32>} : memref<64x32xf32, #tpu.memory_space<vmem>>, vector<64x32xf32>,
    return
  }
  func.func @transform_0(%arg0: i32) -> (i32, i32) {
    %c0_i32 = arith.constant 0 : i32
    %c0_i32_0 = arith.constant 0 : i32
    return %arg0, %c0_i32 : i32, i32
  }
  func.func @transform_1(%arg0: i32) -> (i32, i32) {
    %c0_i32 = arith.constant 0 : i32
    %c0_i32_0 = arith.constant 0 : i32
    %c0_i32_1 = arith.constant 0 : i32
    return %c0_i32, %c0_i32_0 : i32, i32
  }
  func.func @transform_2(%arg0: i32) -> (i32, i32) {
    %c0_i32 = arith.constant 0 : i32
    %c0_i32_0 = arith.constant 0 : i32
    %c0_i32_1 = arith.constant 0 : i32
    return %c0_i32, %c0_i32_0 : i32, i32
  }
  func.func @transform_3(%arg0: i32) -> (i32, i32) {
    %c0_i32 = arith.constant 0 : i32
    %c0_i32_0 = arith.constant 0 : i32
    %c0_i32_1 = arith.constant 0 : i32
    return %c0_i32, %c0_i32_0 : i32, i32
  }
  func.func @transform_4(%arg0: i32) -> (i32, i32) {
    %c0_i32 = arith.constant 0 : i32
    %c0_i32_0 = arith.constant 0 : i32
    %c0_i32_1 = arith.constant 0 : i32
    return %c0_i32, %c0_i32_0 : i32, i32
  }
  func.func @transform_5(%arg0: i32) -> (i32, i32) {
    %c0_i32 = arith.constant 0 : i32
    %c0_i32_0 = arith.constant 0 : i32
    %c0_i32_1 = arith.constant 0 : i32
    return %c0_i32, %c0_i32_0 : i32, i32
  }
  func.func @transform_6(%arg0: i32) -> (i32, i32) {
    %c0_i32 = arith.constant 0 : i32
    %c0_i32_0 = arith.constant 0 : i32
    %c0_i32_1 = arith.constant 0 : i32
    return %c0_i32, %c0_i32_0 : i32, i32
  }
  func.func @transform_7(%arg0: i32) -> (i32, i32) {
    %c0_i32 = arith.constant 0 : i32
    %c0_i32_0 = arith.constant 0 : i32
    %c0_i32_1 = arith.constant 0 : i32
    return %c0_i32, %c0_i32_0 : i32, i32
  }
  func.func @transform_8(%arg0: i32) -> (i32, i32) {
    %c0_i32 = arith.constant 0 : i32
    %c0_i32_0 = arith.constant 0 : i32
    %c0_i32_1 = arith.constant 0 : i32
    return %c0_i32, %c0_i32_0 : i32, i32
  }
  func.func @transform_9(%arg0: i32) -> (i32, i32) {
    %c0_i32 = arith.constant 0 : i32
    %c0_i32_0 = arith.constant 0 : i32
    %c0_i32_1 = arith.constant 0 : i32
    return %c0_i32, %c0_i32_0 : i32, i32
  }
  func.func @transform_10(%arg0: i32) -> (i32, i32) {
    %c0_i32 = arith.constant 0 : i32
    %c0_i32_0 = arith.constant 0 : i32
    %c0_i32_1 = arith.constant 0 : i32
    return %c0_i32, %c0_i32_0 : i32, i32
  }
  func.func @transform_11(%arg0: i32) -> (i32, i32) {
    %c0_i32 = arith.constant 0 : i32
    %c0_i32_0 = arith.constant 0 : i32
    %c0_i32_1 = arith.constant 0 : i32
    return %c0_i32, %c0_i32_0 : i32, i32
  }
  func.func @transform_12(%arg0: i32) -> (i32, i32) {
    %c0_i32 = arith.constant 0 : i32
    %c0_i32_0 = arith.constant 0 : i32
    %c0_i32_1 = arith.constant 0 : i32
    return %c0_i32, %c0_i32_0 : i32, i32
  }
  func.func @transform_13(%arg0: i32) -> (i32, i32) {
    %c0_i32 = arith.constant 0 : i32
    %c0_i32_0 = arith.constant 0 : i32
    return %arg0, %c0_i32 : i32, i32
  }
}

</mosaic_0001>

<bundles_post_ra>
// kernel: _lambda_.1
= control target key start
LH: loop header
LB: loop body
LE: loop exit
PB: predicated region body
PF: predicated region fallthrough
CT: control target
= control target key end

     0   :  { %s4154_s25 = smov 0   ;;  %s4921_s0 = inlined_call_operand.vmem [shape: f32[128,32], index: 0, kind: input, shape index: {}]   ;;  %s4922_s1 = inlined_call_operand.vmem [shape: bf16[32,96], index: 1, kind: input, shape index: {}]   ;;  %s4923_s2 = inlined_call_operand.vmem [shape: f32[1,96], index: 2, kind: input, shape index: {}]   ;;  %s4924_s3 = inlined_call_operand.vmem [shape: bf16[32,32], index: 3, kind: input, shape index: {}]   ;;  %s4925_s4 = inlined_call_operand.vmem [shape: f32[1,32], index: 4, kind: input, shape index: {}]   ;;  %s4926_s5 = inlined_call_operand.vmem [shape: f32[1,32], index: 5, kind: input, shape index: {}, may-alias: {5,11}]   ;;  %s4927_s6 = inlined_call_operand.vmem [shape: f32[1,32], index: 6, kind: input, shape index: {}, may-alias: {6,12}]   ;;  %s4928_s7 = inlined_call_operand.vmem [shape: bf16[32,64], index: 7, kind: input, shape index: {}]   ;;  %s4929_s8 = inlined_call_operand.vmem [shape: f32[1,64], index: 8, kind: input, shape index: {}]   ;;  %s4930_s9 = inlined_call_operand.vmem [shape: bf16[64,32], index: 9, kind: input, shape index: {}]   ;;  %s4931_s10 = inlined_call_operand.vmem [shape: f32[1,32], index: 10, kind: input, shape index: {}]   ;;  %s4932_s11 = inlined_call_operand.vmem [shape: f32[1,32], index: 11, kind: input, shape index: {}, may-alias: {5,11}]   ;;  %s4933_s12 = inlined_call_operand.vmem [shape: f32[1,32], index: 12, kind: input, shape index: {}, may-alias: {6,12}]   ;;  %s4934_s13 = inlined_call_operand.vmem [shape: f32[128,32], index: 13, kind: output, shape index: {}]  }
   0x1 LB: > { %s3367_s26 = sadd.s32 4294967295, %s4066_s25   ;;  %p3371_p0 = scmp.ge.s32.totalorder %s4066_s25, 1  ;;  %s4066_s25 = sphi %s4154_s25, %s23_s25  }
   0x2   : > { %p388_p1 = scmp.lt.s32.totalorder %s4066_s25, 3 }
   0x4   : > { %p389_p2 = pnand %p3371_p0, %p388_p1 }
   0x5   : > { %s3372_s29 = sshll.u32 (!%p389_p2), %s3367_s26, 3  ;;  %s4070_s21 = smov (!%p389_p2), 96  }
   0x6   : > { %392 = sbr.rel (%p389_p2) target bundleno = 4097 (0x1001), region = 72  ;;  %p433_p3 = scmp.lt.s32.totalorder (!%p389_p2), %s3372_s29, 15 }
   0x7   : > { %s4071_s22 = smov (!%p389_p2), 64   ;;  %s4072_s23 = smov (!%p389_p2), 88  }
   0x8   : > { %s4073_s24 = smov (!%p389_p2), 120   ;;  %s4074_s26 = smov (!%p389_p2), 56  }
   0x9   : > { %s4075_s27 = smov (!%p389_p2), 80   ;;  %s4076_s28 = smov (!%p389_p2), 112  }
   0xa   : > { %s4077_s30 = smov (!%p389_p2), 48   ;;  %s4078_s14 = smov (!%p389_p2), 72  }
   0xb   : > { %v3866_v0 = vld [vmem:[%s4922_s1 + $0x8] sm:$0xff]   ;;  %v3867_v1 = vld [vmem:[%s4922_s1] sm:$0xff]   ;;  %s4936_s29 = smov (!%p433_p3, %s3372_s29), 15  ;;  %vm480_vm0 = vcmask 261120   ;;  %v4068_v14 = vmov 0.0   ;;  %vm4069_vm1 = vmmov 0  }
   0xc   : > { %3534 = vmatprep.subr.bf16.mxu0 %v3866_v0  ;;  %3778 = vmatprep.subr.bf16.mxu1 %v3866_v0  ;;  %s3373_s15 = sshll.u32 %s4936_s29, 3  ;;  %v3376_v20 = vld [vmem:[%s4923_s2] ss:$0 sm:$0xff]  ;;  %vm565_vm2 = vcmask 64512   ;;  %vm763_vm3 = vcmask 130048   ;;  %s4079_s16 = smov 104  }
   0xd   : > { %3535 = vmatpush3.bf16.msra.mxu0 %v3866_v0  ;;  %3780 = vmatpush3.bf16.msra.mxu1 %v3866_v0  ;;  %s4176_s18 = scalar_lea.vmem %s4921_s0, %s3373_s15  ;;  %s4080_s17 = smov 40   ;;  %vm2608_vm4 = vcmask 195584   ;;  %vm3083_vm5 = vcmask 523264  }
   0xe   : > { %3536 = vmatprep.subr.bf16.mxu0 %v3867_v1  ;;  %3779 = vmatprep.subr.bf16.mxu1 %v3867_v1  ;;  %v445_v2 = vld [vmem:[%s4176_s18] sm:$0xff]  ;;  %v446_v3 = vld [vmem:[%s4176_s18 + $0x8] sm:$0xff]  ;;  %v447_v7 = vld [vmem:[%s4176_s18 + $0x10] sm:$0xff]  ;;  %s4081_s19 = smov 8   ;;  %s4082_s20 = smov 16  }
   0xf   : > { %v449_v4 = vld [vmem:[%s4176_s18 + $0x20] sm:$0xff]  ;;  %v453_v5 = vpack.c.bf16 %v446_v3, %v445_v2  ;;  %v450_v6 = vld [vmem:[%s4176_s18 + $0x28] sm:$0xff]  ;;  %v448_v8 = vld [vmem:[%s4176_s18 + $0x18] sm:$0xff] }
  0x10   : > { %v455_v9 = vpack.c.bf16 %v450_v6, %v449_v4  ;;  %v454_v10 = vpack.c.bf16 %v448_v8, %v447_v7  ;;  %v451_v11 = vld [vmem:[%s4176_s18 + $0x30] sm:$0xff]  ;;  %v452_v12 = vld [vmem:[%s4176_s18 + $0x38] sm:$0xff] }
  0x11   : > { %3537 = vmatpush3.bf16.msra.mxu0 %v3867_v1  ;;  %3781 = vmatpush3.bf16.msra.mxu1 %v3867_v1  ;;  %v456_v13 = vpack.c.bf16 %v452_v12, %v451_v11 }
  0x12   : > { %3538 = vmatprep.mubr.msk.bf16.mxu0 %vm480_vm0, %v453_v5  ;;  %3542 = vmatprep.mubr.msk.bf16.mxu1 %vm480_vm0, %v455_v9 }
  0x13   : > { %3546 = vmatprep.subr.bf16.mxu1 %v4068_v14  ;;  %3558 = vmatprep.subr.bf16.mxu0 %v4068_v14 }
  0x14   : > { %3539 = vmatmul.mubr.msk.bf16.vlgmr.msra.gmra.mxu0 %vm480_vm0, %v454_v10  ;;  %3543 = vmatmul.mubr.msk.bf16.vlgmr.msra.gmra.mxu1 %vm480_vm0, %v456_v13 }
  0x15   : > { %3548 = vmatprep.mubr.msk.bf16.mxu1 %vm4069_vm1, %v4068_v14  ;;  %3560 = vmatprep.mubr.msk.bf16.mxu0 %vm4069_vm1, %v4068_v14 }
  0xd4   : > { %v3540_v15 = vpop.f32.mrf.mxu0  ;;  %v3544_v16 = vpop.f32.mrf.mxu1 }
  0xd5   : > { %v552_v30 = vadd.f32 %v3544_v16, %v3376_v20  ;;  %v536_v33 = vadd.f32 %v3540_v15, %v3376_v20 }
  0xd6   : > { %v527_v17 = vpop.f32.mrf.mxu0  ;;  %v543_v18 = vpop.f32.mrf.mxu1 }
  0xd7   : > { %v544_v22 = vadd.f32 %v3376_v20, %v543_v18  ;;  %v528_v24 = vadd.f32 %v3376_v20, %v527_v17 }
  0xd8   : > { %v3541_v19 = vpop.f32.mrf.mxu0  ;;  %v3545_v21 = vpop.f32.mrf.mxu1 }
  0xd9   : > { %v539_v28 = vadd.f32 %v3541_v19, %v3376_v20  ;;  %v555_v31 = vadd.f32 %v3545_v21, %v3376_v20 }
  0xda   : > { %v530_v23 = vpop.f32.mrf.mxu0  ;;  %v546_v26 = vpop.f32.mrf.mxu1 }
  0xdb   : > { %v531_v25 = vadd.f32 %v3376_v20, %v530_v23  ;;  %v547_v27 = vadd.f32 %v3376_v20, %v546_v26  ;;  %v4205_v34 = vpack.c.bf16 %v539_v28, %v536_v33  ;;  %v4207_v35 = vpack.c.bf16 %v555_v31, %v552_v30 }
  0xdd   : > { %v4199_v29 = vpack.c.bf16 %v531_v25, %v528_v24  ;;  %v4201_v32 = vpack.c.bf16 %v547_v27, %v544_v22 }
  0xdf   : > { %563 = vrot.lane.b32.xlu0 %v4199_v29, %s4070_s21  ;;  %664 = vrot.lane.b32.xlu1 %v4201_v32, %s4070_s21 }
  0xe3   : > { %614 = vrot.lane.b32.xlu0 %v4205_v34, %s4070_s21  ;;  %714 = vrot.lane.b32.xlu1 %v4207_v35, %s4070_s21 }
 0x151   : > { %v564_v36 = vpop.permute.xlu0 %563  ;;  %v665_v37 = vpop.permute.xlu1 %664 }
 0x152   : > { %v570_v38 = vsel %vm565_vm2, %v564_v36, 0  ;;  %v670_v39 = vsel %vm565_vm2, %v665_v37, 0 }
 0x153   : > { %3547 = vmatpush3.bf16.xpose.msra.mxu1 %v570_v38  ;;  %3559 = vmatpush3.bf16.xpose.msra.mxu0 %v670_v39 }
 0x154   : > { %3552 = vmatprep.subr.bf16.mxu1 %v4068_v14  ;;  %3570 = vmatprep.subr.bf16.mxu0 %v4068_v14 }
 0x155   : > { %v615_v40 = vpop.permute.xlu0 %614  ;;  %v715_v42 = vpop.permute.xlu1 %714 }
 0x156   : > { %v620_v41 = vsel %vm565_vm2, %v615_v40, 0  ;;  %v720_v43 = vsel %vm565_vm2, %v715_v42, 0 }
 0x15a   : > { %3549 = vmatmul.mubr.msk.bf16.vlgmr.msra.gmra.mxu1 %vm565_vm2, %v4199_v29  ;;  %3561 = vmatmul.mubr.msk.bf16.vlgmr.msra.gmra.mxu0 %vm565_vm2, %v4201_v32 }
 0x15b   : > { %3553 = vmatpush3.bf16.xpose.msra.mxu1 %v620_v41  ;;  %3554 = vmatprep.mubr.msk.bf16.mxu1 %vm4069_vm1, %v4068_v14 }
 0x15c   : > { %3564 = vmatprep.subr.bf16.mxu1 %v4068_v14  ;;  %3572 = vmatprep.mubr.msk.bf16.mxu0 %vm4069_vm1, %v4068_v14 }
 0x162   : > { %3555 = vmatmul.mubr.msk.bf16.vlgmr.msra.gmra.mxu1 %vm565_vm2, %v4205_v34 }
 0x163   : > { %3565 = vmatpush3.bf16.xpose.msra.mxu1 %v720_v43  ;;  %3566 = vmatprep.mubr.msk.bf16.mxu1 %vm4069_vm1, %v4068_v14 }
 0x164   : > { %3576 = vmatprep.subr.bf16.mxu1 %v4068_v14 }
 0x16a   : > { %3567 = vmatmul.mubr.msk.bf16.vlgmr.msra.gmra.mxu1 %vm565_vm2, %v4207_v35 }
 0x16b   : > { %3578 = vmatprep.mubr.msk.bf16.mxu1 %vm4069_vm1, %v4068_v14 }
 0x21a   : > { %v606_v44 = vpop.f32.mrf.mxu1  ;;  %v706_v45 = vpop.f32.mrf.mxu0 }
 0x21b   : > { %v764_v46 = vsel %vm763_vm3, %v606_v44, -inf  ;;  %v776_v47 = vsel %vm763_vm3, %v706_v45, -inf }
 0x21c   : > { %765 = vmax.xlane.f32.xlu0 %v764_v46  ;;  %v3550_v48 = vpop.f32.mrf.mxu1  ;;  %777 = vmax.xlane.f32.xlu1 %v776_v47  ;;  %v3562_v49 = vpop.f32.mrf.mxu0 }
 0x21e   : > { %v609_v50 = vpop.f32.mrf.mxu1  ;;  %v709_v51 = vpop.f32.mrf.mxu0 }
 0x21f   : > { %v767_v52 = vsel %vm763_vm3, %v609_v50, -inf  ;;  %v779_v62 = vsel %vm763_vm3, %v709_v51, -inf }
 0x220   : > { %v3551_v53 = vpop.f32.mrf.mxu1  ;;  %v3563_v54 = vpop.f32.mrf.mxu0  ;;  %768 = vmax.xlane.f32.xlu1 %v767_v52 }
 0x222   : > { %v656_v55 = vpop.f32.mrf.mxu1 }
 0x223   : > { %v770_v56 = vsel %vm763_vm3, %v656_v55, -inf }
 0x224   : > { %771 = vmax.xlane.f32.xlu0 %v770_v56  ;;  %v3556_v57 = vpop.f32.mrf.mxu1 }
 0x226   : > { %v659_v58 = vpop.f32.mrf.mxu1 }
 0x227   : > { %v773_v59 = vsel %vm763_vm3, %v659_v58, -inf }
 0x228   : > { %774 = vmax.xlane.f32.xlu0 %v773_v59  ;;  %v3557_v60 = vpop.f32.mrf.mxu1 }
 0x22a   : > { %v756_v61 = vpop.f32.mrf.mxu1 }
 0x22b   : > { %v782_v63 = vsel %vm763_vm3, %v756_v61, -inf }
 0x22c   : > { %780 = vmax.xlane.f32.xlu0 %v779_v62  ;;  %783 = vmax.xlane.f32.xlu1 %v782_v63  ;;  %v3568_v0 = vpop.f32.mrf.mxu1 }
 0x22e   : > { %v759_v1 = vpop.f32.mrf.mxu1 }
 0x22f   : > { %v785_v2 = vsel %vm763_vm3, %v759_v1, -inf }
 0x230   : > { %786 = vmax.xlane.f32.xlu0 %v785_v2  ;;  %v3569_v3 = vpop.f32.mrf.mxu1 }
 0x23d   : > { %856 = vrot.lane.b32.xlu1 %v4199_v29, %s4071_s22 }
 0x2a5   : > { %v766_v4 = vpop.xlane.xlu0 %765  ;;  %v778_v5 = vpop.xlane.xlu1 %777 }
 0x2a6   : > { %v788_v6 = vsub.f32 %v606_v44, %v766_v4  ;;  %v792_v7 = vsub.f32 %v706_v45, %v778_v5 }
 0x2a8   : > { %v796_v8 = vmul.f32 1.442695, %v788_v6  ;;  %v804_v9 = vmul.f32 1.442695, %v792_v7 }
 0x2a9   : > { %v769_v10 = vpop.xlane.xlu1 %768 }
 0x2aa   : > { %3876 = vpow2.f32 %v796_v8  ;;  %v789_v11 = vsub.f32 %v609_v50, %v769_v10 }
 0x2ab   : > { %3878 = vpow2.f32 %v804_v9 }
 0x2ac   : > { %v798_v12 = vmul.f32 1.442695, %v789_v11 }
 0x2ad   : > { %v772_v13 = vpop.xlane.xlu0 %771 }
 0x2ae   : > { %v790_v15 = vsub.f32 %v656_v55, %v772_v13  ;;  %3880 = vpow2.f32 %v798_v12 }
 0x2b0   : > { %v800_v16 = vmul.f32 1.442695, %v790_v15 }
 0x2b1   : > { %v775_v17 = vpop.xlane.xlu0 %774 }
 0x2b2   : > { %3882 = vpow2.f32 %v800_v16  ;;  %v791_v18 = vsub.f32 %v659_v58, %v775_v17 }
 0x2b4   : > { %v802_v26 = vmul.f32 1.442695, %v791_v18 }
 0x2b5   : > { %v784_v19 = vpop.xlane.xlu1 %783  ;;  %v781_v20 = vpop.xlane.xlu0 %780 }
 0x2b6   : > { %v793_v21 = vsub.f32 %v709_v51, %v781_v20  ;;  %v794_v41 = vsub.f32 %v756_v61, %v784_v19 }
 0x2b7   : > { %v4245_v22 = vpop.eup %3876 }
 0x2b8   : > { %v806_v23 = vmul.f32 1.442695, %v793_v21  ;;  %v812_v24 = vsel %vm763_vm3, %v4245_v22, 0.0  ;;  %v4249_v25 = vpop.eup %3878  ;;  %v808_v42 = vmul.f32 1.442695, %v794_v41 }
 0x2b9   : > { %v857_v27 = vpop.permute.xlu1 %856  ;;  %813 = vadd.xlane.f32.xlu1 %v812_v24  ;;  %v824_v30 = vsel %vm763_vm3, %v4249_v25, 0.0  ;;  %v787_v43 = vpop.xlane.xlu0 %786 }
 0x2ba   : > { %3571 = vmatpush3.bf16.msra.mxu0 %v857_v27  ;;  %3884 = vpow2.f32 %v806_v23  ;;  %v795_v44 = vsub.f32 %v759_v1, %v787_v43 }
 0x2bb   : > { %3582 = vmatprep.subr.bf16.mxu0 %v4068_v14  ;;  %v3881_v28 = vpop.eup %3880  ;;  %3886 = vpow2.f32 %v802_v26 }
 0x2bc   : > { %v815_v31 = vsel %vm763_vm3, %v3881_v28, 0.0  ;;  %3888 = vpow2.f32 %v808_v42  ;;  %v810_v45 = vmul.f32 1.442695, %v795_v44 }
 0x2bd   : > { %825 = vadd.xlane.f32.xlu1 %v824_v30  ;;  %816 = vadd.xlane.f32.xlu0 %v815_v31 }
 0x2be   : > { %3890 = vpow2.f32 %v810_v45 }
 0x2bf   : > { %v4255_v33 = vpop.eup %3882 }
 0x2c0   : > { %v818_v36 = vsel %vm763_vm3, %v4255_v33, 0.0 }
 0x2c1   : > { %819 = vadd.xlane.f32.xlu1 %v818_v36 }
 0x2c7   : > { %v3885_v37 = vpop.eup %3884 }
 0x2c8   : > { %v827_v38 = vsel %vm763_vm3, %v3885_v37, 0.0  ;;  %v4260_v39 = vpop.eup %3886 }
 0x2c9   : > { %828 = vadd.xlane.f32.xlu0 %v827_v38  ;;  %v821_v40 = vsel %vm763_vm3, %v4260_v39, 0.0  ;;  %v4270_v46 = vpop.eup %3888 }
 0x2ca   : > { %v830_v47 = vsel %vm763_vm3, %v4270_v46, 0.0 }
 0x2cb   : > { %v4274_v48 = vpop.eup %3890 }
 0x2cc   : > { %v833_v49 = vsel %vm763_vm3, %v4274_v48, 0.0 }
 0x2cd   : > { %822 = vadd.xlane.f32.xlu0 %v821_v40 }
 0x2d2   : > { %950 = vrot.lane.b32.xlu1 %v4201_v32, %s4071_s22 }
 0x2d6   : > { %997 = vrot.lane.b32.xlu1 %v4207_v35, %s4071_s22 }
 0x2e3   : > { %903 = vrot.lane.b32.xlu0 %v4205_v34, %s4071_s22 }
 0x2fa   : > { %831 = vadd.xlane.f32.xlu1 %v830_v47 }
 0x302   : > { %834 = vadd.xlane.f32.xlu0 %v833_v49 }
 0x30b   : > { %1097 = vrot.lane.b32.xlu1 %v4205_v34, %s4072_s23 }
 0x30f   : > { %1148 = vrot.lane.b32.xlu1 %v4201_v32, %s4072_s23 }
 0x313   : > { %1199 = vrot.lane.b32.xlu1 %v4207_v35, %s4072_s23 }
 0x317   : > { %1197 = vrot.lane.b32.xlu1 %v4207_v35, %s4073_s24 }
 0x318   : > { %1046 = vrot.lane.b32.xlu0 %v4199_v29, %s4072_s23 }
 0x31c   : > { %1044 = vrot.lane.b32.xlu0 %v4199_v29, %s4073_s24 }
 0x320   : > { %1095 = vrot.lane.b32.xlu0 %v4205_v34, %s4073_s24 }
 0x324   : > { %1146 = vrot.lane.b32.xlu0 %v4201_v32, %s4073_s24 }
 0x342   : > { %v814_v50 = vpop.xlane.xlu1 %813 }
 0x343   : > { %3892 = vrcp.f32 %v814_v50 }
 0x346   : > { %v817_v51 = vpop.xlane.xlu0 %816  ;;  %v826_v52 = vpop.xlane.xlu1 %825 }
 0x347   : > { %3894 = vrcp.f32 %v817_v51 }
 0x348   : > { %3896 = vrcp.f32 %v826_v52 }
 0x34a   : > { %v820_v54 = vpop.xlane.xlu1 %819 }
 0x34e   : > { %v951_v61 = vpop.permute.xlu1 %950 }
 0x350   : > { %v3893_v53 = vpop.eup %3892 }
 0x351   : > { %v844_v57 = vmul.f32 %v3893_v53, %v4245_v22 }
 0x352   : > { %v829_v55 = vpop.xlane.xlu0 %828  ;;  %v998_v9 = vpop.permute.xlu1 %997 }
 0x353   : > { %3898 = vrcp.f32 %v829_v55 }
 0x354   : > { %v3895_v56 = vpop.eup %3894  ;;  %3900 = vrcp.f32 %v820_v54 }
 0x355   : > { %v845_v58 = vmul.f32 %v3895_v56, %v3881_v28  ;;  %v3897_v63 = vpop.eup %3896 }
 0x356   : > { %v823_v59 = vpop.xlane.xlu0 %822  ;;  %v848_v1 = vmul.f32 %v3897_v63, %v4249_v25 }
 0x357   : > { %3902 = vrcp.f32 %v823_v59  ;;  %v852_v60 = vpack.c.bf16 %v845_v58, %v844_v57 }
 0x359   : > { %3573 = vmatmul.mubr.msk.bf16.vlgmr.msra.gmra.mxu0 %vm763_vm3, %v852_v60 }
 0x35a   : > { %3583 = vmatpush3.bf16.msra.mxu0 %v951_v61  ;;  %v904_v62 = vpop.permute.xlu0 %903  ;;  %3584 = vmatprep.mubr.msk.bf16.mxu0 %vm4069_vm1, %v4068_v14 }
 0x35b   : > { %3577 = vmatpush3.bf16.msra.mxu1 %v904_v62  ;;  %3594 = vmatprep.subr.bf16.mxu0 %v4068_v14 }
 0x35c   : > { %3588 = vmatprep.subr.bf16.mxu1 %v4068_v14 }
 0x360   : > { %v3899_v0 = vpop.eup %3898 }
 0x361   : > { %v849_v2 = vmul.f32 %v3899_v0, %v3885_v37  ;;  %v3901_v3 = vpop.eup %3900 }
 0x362   : > { %v846_v6 = vmul.f32 %v3901_v3, %v4255_v33 }
 0x363   : > { %v854_v4 = vpack.c.bf16 %v849_v2, %v848_v1 }
 0x364   : > { %v3903_v5 = vpop.eup %3902 }
 0x365   : > { %3585 = vmatmul.mubr.msk.bf16.vlgmr.msra.gmra.mxu0 %vm763_vm3, %v854_v4  ;;  %v847_v7 = vmul.f32 %v3903_v5, %v4260_v39 }
 0x366   : > { %3596 = vmatprep.mubr.msk.bf16.mxu0 %vm4069_vm1, %v4068_v14 }
 0x367   : > { %v853_v8 = vpack.c.bf16 %v847_v7, %v846_v6 }
 0x369   : > { %3579 = vmatmul.mubr.msk.bf16.vlgmr.msra.gmra.mxu1 %vm763_vm3, %v853_v8 }
 0x36a   : > { %3589 = vmatpush3.bf16.msra.mxu1 %v998_v9  ;;  %3590 = vmatprep.mubr.msk.bf16.mxu1 %vm4069_vm1, %v4068_v14 }
 0x36b   : > { %3600 = vmatprep.subr.bf16.mxu1 %v4068_v14 }
 0x383   : > { %v832_v10 = vpop.xlane.xlu1 %831 }
 0x384   : > { %3904 = vrcp.f32 %v832_v10 }
 0x387   : > { %v1098_v12 = vpop.permute.xlu1 %1097 }
 0x388   : > { %v1103_v25 = vsel %vm565_vm2, %v1098_v12, 0 }
 0x38b   : > { %v835_v11 = vpop.xlane.xlu0 %834  ;;  %v1149_v17 = vpop.permute.xlu1 %1148 }
 0x38c   : > { %3906 = vrcp.f32 %v835_v11  ;;  %v1154_v19 = vsel %vm565_vm2, %v1149_v17, 0 }
 0x38f   : > { %v1047_v13 = vpop.permute.xlu0 %1046  ;;  %v1200_v27 = vpop.permute.xlu1 %1199 }
 0x390   : > { %v1052_v15 = vsel %vm565_vm2, %v1047_v13, 0  ;;  %v1205_v28 = vsel %vm565_vm2, %v1200_v27, 0 }
 0x391   : > { %3595 = vmatpush3.bf16.xpose.msra.mxu0 %v1052_v15  ;;  %v3905_v18 = vpop.eup %3904 }
 0x392   : > { %3606 = vmatprep.subr.bf16.mxu0 %v4068_v14  ;;  %v850_v22 = vmul.f32 %v3905_v18, %v4270_v46 }
 0x393   : > { %v1045_v16 = vpop.permute.xlu0 %1044  ;;  %v1198_v30 = vpop.permute.xlu1 %1197 }
 0x397   : > { %v1096_v21 = vpop.permute.xlu0 %1095 }
 0x398   : > { %3597 = vmatmul.mubr.msk.bf16.vlgmr.msra.gmra.mxu0 %vm565_vm2, %v1045_v16 }
 0x399   : > { %v3907_v20 = vpop.eup %3906  ;;  %3607 = vmatpush3.bf16.xpose.msra.mxu0 %v1154_v19  ;;  %3608 = vmatprep.mubr.msk.bf16.mxu0 %vm4069_vm1, %v4068_v14 }
 0x39a   : > { %v851_v23 = vmul.f32 %v3907_v20, %v4274_v48  ;;  %3618 = vmatprep.subr.bf16.mxu0 %v4068_v14 }
 0x39b   : > { %v1147_v26 = vpop.permute.xlu0 %1146 }
 0x39c   : > { %v855_v24 = vpack.c.bf16 %v851_v23, %v850_v22 }
 0x39e   : > { %3591 = vmatmul.mubr.msk.bf16.vlgmr.msra.gmra.mxu1 %vm763_vm3, %v855_v24 }
 0x39f   : > { %3601 = vmatpush3.bf16.xpose.msra.mxu1 %v1103_v25  ;;  %3602 = vmatprep.mubr.msk.bf16.mxu1 %vm4069_vm1, %v4068_v14 }
 0x3a0   : > { %3609 = vmatmul.mubr.msk.bf16.vlgmr.msra.gmra.mxu0 %vm565_vm2, %v1147_v26  ;;  %3612 = vmatprep.subr.bf16.mxu1 %v4068_v14 }
 0x3a1   : > { %3620 = vmatprep.mubr.msk.bf16.mxu0 %vm4069_vm1, %v4068_v14 }
 0x3a6   : > { %3603 = vmatmul.mubr.msk.bf16.vlgmr.msra.gmra.mxu1 %vm565_vm2, %v1096_v21 }
 0x3a7   : > { %3613 = vmatpush3.bf16.xpose.msra.mxu1 %v1205_v28  ;;  %3614 = vmatprep.mubr.msk.bf16.mxu1 %vm4069_vm1, %v4068_v14 }
 0x3a8   : > { %3624 = vmatprep.subr.bf16.mxu1 %v4068_v14 }
 0x3ae   : > { %3615 = vmatmul.mubr.msk.bf16.vlgmr.msra.gmra.mxu1 %vm565_vm2, %v1198_v30 }
 0x3af   : > { %3626 = vmatprep.mubr.msk.bf16.mxu1 %vm4069_vm1, %v4068_v14 }
 0x419   : > { %v4327_v31 = vpop.f32.mrf.mxu0 }
 0x41b   : > { %v3574_v33 = vpop.f32.mrf.mxu0 }
 0x41d   : > { %v4329_v36 = vpop.f32.mrf.mxu0 }
 0x41f   : > { %v3575_v37 = vpop.f32.mrf.mxu0 }
 0x425   : > { %v4331_v38 = vpop.f32.mrf.mxu0 }
 0x427   : > { %v3586_v39 = vpop.f32.mrf.mxu0 }
 0x429   : > { %v4333_v40 = vpop.f32.mrf.mxu1  ;;  %v4335_v41 = vpop.f32.mrf.mxu0 }
 0x42b   : > { %v3580_v42 = vpop.f32.mrf.mxu1  ;;  %v3587_v43 = vpop.f32.mrf.mxu0 }
 0x42d   : > { %v4337_v44 = vpop.f32.mrf.mxu1 }
 0x42f   : > { %v3581_v45 = vpop.f32.mrf.mxu1 }
 0x458   : > { %v1088_v46 = vpop.f32.mrf.mxu0 }
 0x459   : > { %v1248_v47 = vsel %vm763_vm3, %v1088_v46, -inf }
 0x45a   : > { %1249 = vmax.xlane.f32.xlu0 %v1248_v47  ;;  %v3598_v48 = vpop.f32.mrf.mxu0 }
 0x45c   : > { %v1091_v49 = vpop.f32.mrf.mxu0 }
 0x45d   : > { %v1251_v50 = vsel %vm763_vm3, %v1091_v49, -inf }
 0x45e   : > { %v4341_v51 = vpop.f32.mrf.mxu1  ;;  %1252 = vmax.xlane.f32.xlu1 %v1251_v50  ;;  %v3599_v52 = vpop.f32.mrf.mxu0 }
 0x460   : > { %v3592_v53 = vpop.f32.mrf.mxu1  ;;  %v1190_v54 = vpop.f32.mrf.mxu0 }
 0x461   : > { %v1260_v55 = vsel %vm763_vm3, %v1190_v54, -inf }
 0x462   : > { %v4344_v56 = vpop.f32.mrf.mxu1  ;;  %1261 = vmax.xlane.f32.xlu1 %v1260_v55  ;;  %v3610_v57 = vpop.f32.mrf.mxu0 }
 0x464   : > { %v3593_v58 = vpop.f32.mrf.mxu1  ;;  %v1193_v59 = vpop.f32.mrf.mxu0 }
 0x465   : > { %v1263_v5 = vsel %vm763_vm3, %v1193_v59, -inf }
 0x466   : > { %v1139_v60 = vpop.f32.mrf.mxu1  ;;  %v3611_v61 = vpop.f32.mrf.mxu0 }
 0x467   : > { %v1254_v62 = vsel %vm763_vm3, %v1139_v60, -inf }
 0x468   : > { %1255 = vmax.xlane.f32.xlu0 %v1254_v62  ;;  %v3604_v63 = vpop.f32.mrf.mxu1 }
 0x46a   : > { %v1142_v0 = vpop.f32.mrf.mxu1 }
 0x46b   : > { %v1257_v1 = vsel %vm763_vm3, %v1142_v0, -inf }
 0x46c   : > { %1258 = vmax.xlane.f32.xlu0 %v1257_v1  ;;  %v3605_v2 = vpop.f32.mrf.mxu1 }
 0x46e   : > { %v1241_v3 = vpop.f32.mrf.mxu1 }
 0x46f   : > { %v1266_v4 = vsel %vm763_vm3, %v1241_v3, -inf }
 0x470   : > { %v3616_v6 = vpop.f32.mrf.mxu1  ;;  %1267 = vmax.xlane.f32.xlu1 %v1266_v4  ;;  %1264 = vmax.xlane.f32.xlu0 %v1263_v5 }
 0x472   : > { %v1244_v7 = vpop.f32.mrf.mxu1 }
 0x473   : > { %v1269_v8 = vsel %vm763_vm3, %v1244_v7, -inf }
 0x474   : > { %v3617_v9 = vpop.f32.mrf.mxu1  ;;  %1270 = vmax.xlane.f32.xlu0 %v1269_v8 }
 0x481   : > { %1340 = vrot.lane.b32.xlu1 %v4199_v29, %s4074_s26 }
 0x485   : > { %1434 = vrot.lane.b32.xlu1 %v4201_v32, %s4074_s26 }
 0x489   : > { %1481 = vrot.lane.b32.xlu1 %v4207_v35, %s4074_s26 }
 0x48a   : > { %1387 = vrot.lane.b32.xlu0 %v4205_v34, %s4074_s26  ;;  %s4083_s26 = smov 24  }
 0x4e3   : > { %v1250_v10 = vpop.xlane.xlu0 %1249 }
 0x4e4   : > { %v1272_v11 = vsub.f32 %v1088_v46, %v1250_v10 }
 0x4e6   : > { %v1280_v12 = vmul.f32 1.442695, %v1272_v11 }
 0x4e7   : > { %v1253_v13 = vpop.xlane.xlu1 %1252 }
 0x4e8   : > { %3908 = vpow2.f32 %v1280_v12  ;;  %v1273_v15 = vsub.f32 %v1091_v49, %v1253_v13 }
 0x4ea   : > { %v1282_v16 = vmul.f32 1.442695, %v1273_v15 }
 0x4eb   : > { %v1262_v17 = vpop.xlane.xlu1 %1261 }
 0x4ec   : > { %3910 = vpow2.f32 %v1282_v16  ;;  %v1276_v18 = vsub.f32 %v1190_v54, %v1262_v17 }
 0x4ee   : > { %v1288_v21 = vmul.f32 1.442695, %v1276_v18 }
 0x4f1   : > { %v1256_v19 = vpop.xlane.xlu0 %1255 }
 0x4f2   : > { %v1274_v20 = vsub.f32 %v1139_v60, %v1256_v19 }
 0x4f4   : > { %v1284_v22 = vmul.f32 1.442695, %v1274_v20 }
 0x4f5   : > { %v4355_v23 = vpop.eup %3908  ;;  %v1259_v24 = vpop.xlane.xlu0 %1258 }
 0x4f6   : > { %3912 = vpow2.f32 %v1284_v22  ;;  %v1275_v25 = vsub.f32 %v1142_v0, %v1259_v24  ;;  %v1296_v26 = vsel %vm763_vm3, %v4355_v23, 0.0 }
 0x4f7   : > { %1297 = vadd.xlane.f32.xlu1 %v1296_v26  ;;  %3914 = vpow2.f32 %v1288_v21 }
 0x4f8   : > { %v1286_v27 = vmul.f32 1.442695, %v1275_v25 }
 0x4f9   : > { %v4359_v28 = vpop.eup %3910  ;;  %v1268_v30 = vpop.xlane.xlu1 %1267 }
 0x4fa   : > { %v1265_v33 = vpop.xlane.xlu0 %1264  ;;  %3916 = vpow2.f32 %v1286_v27  ;;  %v1278_v37 = vsub.f32 %v1241_v3, %v1268_v30  ;;  %v1299_v42 = vsel %vm763_vm3, %v4359_v28, 0.0 }
 0x4fb   : > { %v1277_v39 = vsub.f32 %v1193_v59, %v1265_v33  ;;  %1300 = vadd.xlane.f32.xlu0 %v1299_v42 }
 0x4fc   : > { %v1292_v43 = vmul.f32 1.442695, %v1278_v37 }
 0x4fd   : > { %v1290_v45 = vmul.f32 1.442695, %v1277_v39  ;;  %v1341_v46 = vpop.permute.xlu1 %1340 }
 0x4fe   : > { %v1271_v47 = vpop.xlane.xlu0 %1270  ;;  %3918 = vpow2.f32 %v1292_v43  ;;  %3619 = vmatpush3.bf16.msra.mxu0 %v1341_v46 }
 0x4ff   : > { %v1279_v48 = vsub.f32 %v1244_v7, %v1271_v47  ;;  %3920 = vpow2.f32 %v1290_v45  ;;  %3630 = vmatprep.subr.bf16.mxu0 %v4068_v14 }
 0x501   : > { %v1294_v49 = vmul.f32 1.442695, %v1279_v48  ;;  %v1435_v1 = vpop.permute.xlu1 %1434 }
 0x502   : > { %v1388_v50 = vpop.permute.xlu0 %1387 }
 0x503   : > { %3922 = vpow2.f32 %v1294_v49  ;;  %3625 = vmatpush3.bf16.msra.mxu1 %v1388_v50  ;;  %v3913_v52 = vpop.eup %3912 }
 0x504   : > { %3636 = vmatprep.subr.bf16.mxu1 %v4068_v14  ;;  %v1302_v53 = vsel %vm763_vm3, %v3913_v52, 0.0  ;;  %v3915_v54 = vpop.eup %3914 }
 0x505   : > { %1303 = vadd.xlane.f32.xlu1 %v1302_v53  ;;  %v1308_v57 = vsel %vm763_vm3, %v3915_v54, 0.0  ;;  %v1482_v2 = vpop.permute.xlu1 %1481 }
 0x507   : > { %v3917_v55 = vpop.eup %3916 }
 0x508   : > { %v1305_v58 = vsel %vm763_vm3, %v3917_v55, 0.0 }
 0x509   : > { %1309 = vadd.xlane.f32.xlu1 %v1308_v57  ;;  %1306 = vadd.xlane.f32.xlu0 %v1305_v58 }
 0x50b   : > { %v4368_v59 = vpop.eup %3918 }
 0x50c   : > { %v3921_v60 = vpop.eup %3920  ;;  %v1314_v61 = vsel %vm763_vm3, %v4368_v59, 0.0 }
 0x50d   : > { %1315 = vadd.xlane.f32.xlu1 %v1314_v61  ;;  %v1311_v62 = vsel %vm763_vm3, %v3921_v60, 0.0 }
 0x50e   : > { %1312 = vadd.xlane.f32.xlu0 %v1311_v62 }
 0x510   : > { %v3923_v63 = vpop.eup %3922 }
 0x511   : > { %v1317_v0 = vsel %vm763_vm3, %v3923_v63, 0.0 }
 0x512   : > { %1318 = vadd.xlane.f32.xlu0 %v1317_v0 }
 0x51e   : > { %1581 = vrot.lane.b32.xlu1 %v4205_v34, %s4075_s27 }
 0x522   : > { %1632 = vrot.lane.b32.xlu1 %v4201_v32, %s4075_s27 }
 0x526   : > { %1683 = vrot.lane.b32.xlu1 %v4207_v35, %s4075_s27 }
 0x528   : > { %1530 = vrot.lane.b32.xlu0 %v4199_v29, %s4075_s27  ;;  %s4893_s27 = scalar_lea.vmem %s4934_s13, %s3373_s15 }
 0x52a   : > { %1681 = vrot.lane.b32.xlu1 %v4207_v35, %s4076_s28 }
 0x52c   : > { %1528 = vrot.lane.b32.xlu0 %v4199_v29, %s4076_s28 }
 0x530   : > { %1579 = vrot.lane.b32.xlu0 %v4205_v34, %s4076_s28 }
 0x534   : > { %1630 = vrot.lane.b32.xlu0 %v4201_v32, %s4076_s28 }
 0x580   : > { %v1298_v3 = vpop.xlane.xlu1 %1297 }
 0x581   : > { %3924 = vrcp.f32 %v1298_v3 }
 0x584   : > { %v1301_v4 = vpop.xlane.xlu0 %1300 }
 0x585   : > { %3926 = vrcp.f32 %v1301_v4 }
 0x58e   : > { %v1304_v5 = vpop.xlane.xlu1 %1303  ;;  %v3925_v6 = vpop.eup %3924 }
 0x58f   : > { %3928 = vrcp.f32 %v1304_v5  ;;  %v1328_v10 = vmul.f32 %v3925_v6, %v4355_v23 }
 0x592   : > { %v3927_v7 = vpop.eup %3926  ;;  %v1310_v8 = vpop.xlane.xlu1 %1309 }
 0x593   : > { %v1307_v9 = vpop.xlane.xlu0 %1306  ;;  %v1329_v11 = vmul.f32 %v3927_v7, %v4359_v28 }
 0x594   : > { %3930 = vrcp.f32 %v1307_v9 }
 0x595   : > { %v1336_v12 = vpack.c.bf16 %v1329_v11, %v1328_v10  ;;  %3932 = vrcp.f32 %v1310_v8 }
 0x596   : > { %v1316_v13 = vpop.xlane.xlu1 %1315 }
 0x597   : > { %v1313_v15 = vpop.xlane.xlu0 %1312  ;;  %3621 = vmatmul.mubr.msk.bf16.vlgmr.msra.gmra.mxu0 %vm763_vm3, %v1336_v12 }
 0x598   : > { %3934 = vrcp.f32 %v1313_v15  ;;  %3631 = vmatpush3.bf16.msra.mxu0 %v1435_v1  ;;  %3632 = vmatprep.mubr.msk.bf16.mxu0 %vm4069_vm1, %v4068_v14 }
 0x599   : > { %3642 = vmatprep.subr.bf16.mxu0 %v4068_v14  ;;  %3936 = vrcp.f32 %v1316_v13 }
 0x59a   : > { %v1582_v27 = vpop.permute.xlu1 %1581 }
 0x59b   : > { %v1319_v16 = vpop.xlane.xlu0 %1318  ;;  %v1587_v47 = vsel %vm565_vm2, %v1582_v27, 0 }
 0x59c   : > { %3938 = vrcp.f32 %v1319_v16  ;;  %v3929_v17 = vpop.eup %3928 }
 0x59d   : > { %v1330_v19 = vmul.f32 %v3929_v17, %v3913_v52 }
 0x59e   : > { %v1633_v45 = vpop.permute.xlu1 %1632 }
 0x59f   : > { %v1531_v28 = vpop.permute.xlu0 %1530  ;;  %v1638_v48 = vsel %vm565_vm2, %v1633_v45, 0 }
 0x5a0   : > { %v1536_v37 = vsel %vm565_vm2, %v1531_v28, 0 }
 0x5a1   : > { %v3931_v18 = vpop.eup %3930 }
 0x5a2   : > { %v1331_v20 = vmul.f32 %v3931_v18, %v3917_v55  ;;  %v3933_v21 = vpop.eup %3932  ;;  %v1684_v49 = vpop.permute.xlu1 %1683 }
 0x5a3   : > { %v1332_v24 = vmul.f32 %v3933_v21, %v3915_v54  ;;  %v1529_v46 = vpop.permute.xlu0 %1528  ;;  %v1689_v52 = vsel %vm565_vm2, %v1684_v49, 0 }
 0x5a4   : > { %v1337_v22 = vpack.c.bf16 %v1331_v20, %v1330_v19 }
 0x5a5   : > { %v3935_v23 = vpop.eup %3934 }
 0x5a6   : > { %3627 = vmatmul.mubr.msk.bf16.vlgmr.msra.gmra.mxu1 %vm763_vm3, %v1337_v22  ;;  %v1333_v25 = vmul.f32 %v3935_v23, %v3921_v60  ;;  %v3937_v26 = vpop.eup %3936  ;;  %v1682_v54 = vpop.permute.xlu1 %1681 }
 0x5a7   : > { %3637 = vmatpush3.bf16.msra.mxu1 %v1482_v2  ;;  %3638 = vmatprep.mubr.msk.bf16.mxu1 %vm4069_vm1, %v4068_v14  ;;  %v1334_v39 = vmul.f32 %v3937_v26, %v4368_v59  ;;  %v1580_v50 = vpop.permute.xlu0 %1579 }
 0x5a8   : > { %v1338_v30 = vpack.c.bf16 %v1333_v25, %v1332_v24  ;;  %3648 = vmatprep.subr.bf16.mxu1 %v4068_v14 }
 0x5a9   : > { %v3939_v33 = vpop.eup %3938 }
 0x5aa   : > { %3633 = vmatmul.mubr.msk.bf16.vlgmr.msra.gmra.mxu0 %vm763_vm3, %v1338_v30  ;;  %v1335_v42 = vmul.f32 %v3939_v33, %v3923_v63 }
 0x5ab   : > { %3643 = vmatpush3.bf16.xpose.msra.mxu0 %v1536_v37  ;;  %3644 = vmatprep.mubr.msk.bf16.mxu0 %vm4069_vm1, %v4068_v14  ;;  %v1631_v53 = vpop.permute.xlu0 %1630 }
 0x5ac   : > { %v1339_v43 = vpack.c.bf16 %v1335_v42, %v1334_v39  ;;  %3654 = vmatprep.subr.bf16.mxu0 %v4068_v14 }
 0x5ae   : > { %3639 = vmatmul.mubr.msk.bf16.vlgmr.msra.gmra.mxu1 %vm763_vm3, %v1339_v43 }
 0x5af   : > { %3649 = vmatpush3.bf16.xpose.msra.mxu1 %v1587_v47  ;;  %3650 = vmatprep.mubr.msk.bf16.mxu1 %vm4069_vm1, %v4068_v14 }
 0x5b0   : > { %3660 = vmatprep.subr.bf16.mxu1 %v4068_v14 }
 0x5b2   : > { %3645 = vmatmul.mubr.msk.bf16.vlgmr.msra.gmra.mxu0 %vm565_vm2, %v1529_v46 }
 0x5b3   : > { %3655 = vmatpush3.bf16.xpose.msra.mxu0 %v1638_v48  ;;  %3656 = vmatprep.mubr.msk.bf16.mxu0 %vm4069_vm1, %v4068_v14 }
 0x5b4   : > { %3666 = vmatprep.subr.bf16.mxu0 %v4068_v14 }
 0x5b6   : > { %3651 = vmatmul.mubr.msk.bf16.vlgmr.msra.gmra.mxu1 %vm565_vm2, %v1580_v50 }
 0x5b7   : > { %3661 = vmatpush3.bf16.xpose.msra.mxu1 %v1689_v52  ;;  %3662 = vmatprep.mubr.msk.bf16.mxu1 %vm4069_vm1, %v4068_v14 }
 0x5b8   : > { %3672 = vmatprep.subr.bf16.mxu1 %v4068_v14 }
 0x5ba   : > { %3657 = vmatmul.mubr.msk.bf16.vlgmr.msra.gmra.mxu0 %vm565_vm2, %v1631_v53 }
 0x5bb   : > { %3668 = vmatprep.mubr.msk.bf16.mxu0 %vm4069_vm1, %v4068_v14 }
 0x5be   : > { %3663 = vmatmul.mubr.msk.bf16.vlgmr.msra.gmra.mxu1 %vm565_vm2, %v1682_v54 }
 0x5bf   : > { %3674 = vmatprep.mubr.msk.bf16.mxu1 %vm4069_vm1, %v4068_v14 }
 0x657   : > { %v4419_v55 = vpop.f32.mrf.mxu0 }
 0x659   : > { %v3622_v57 = vpop.f32.mrf.mxu0 }
 0x65b   : > { %v4421_v58 = vpop.f32.mrf.mxu0 }
 0x65c   : > { %v3806_v59 = vpack.i.bf16 %v4421_v58, %v4419_v55 }
 0x65d   : > { %v3623_v60 = vpop.f32.mrf.mxu0 }
 0x666   : > { %v4425_v61 = vpop.f32.mrf.mxu1 }
 0x668   : > { %v3628_v62 = vpop.f32.mrf.mxu1 }
 0x66a   : > { %v4427_v63 = vpop.f32.mrf.mxu1  ;;  %v4429_v0 = vpop.f32.mrf.mxu0 }
 0x66b   : > { %v3811_v1 = vpack.i.bf16 %v4427_v63, %v4425_v61 }
 0x66c   : > { %v3629_v2 = vpop.f32.mrf.mxu1  ;;  %v3634_v3 = vpop.f32.mrf.mxu0 }
 0x66e   : > { %v4433_v4 = vpop.f32.mrf.mxu0  ;;  %v4435_v5 = vpop.f32.mrf.mxu1 }
 0x66f   : > { %v3826_v6 = vpack.i.bf16 %v4433_v4, %v4429_v0 }
 0x670   : > { %v3635_v7 = vpop.f32.mrf.mxu0  ;;  %v3640_v8 = vpop.f32.mrf.mxu1 }
 0x672   : > { %v4439_v9 = vpop.f32.mrf.mxu1  ;;  %v1572_v10 = vpop.f32.mrf.mxu0 }
 0x673   : > { %v3831_v11 = vpack.i.bf16 %v4439_v9, %v4435_v5  ;;  %v1732_v12 = vsel %vm763_vm3, %v1572_v10, -inf }
 0x674   : > { %v3641_v13 = vpop.f32.mrf.mxu1  ;;  %1733 = vmax.xlane.f32.xlu0 %v1732_v12  ;;  %v3646_v15 = vpop.f32.mrf.mxu0 }
 0x676   : > { %v1575_v16 = vpop.f32.mrf.mxu0  ;;  %v1623_v17 = vpop.f32.mrf.mxu1 }
 0x677   : > { %v1735_v18 = vsel %vm763_vm3, %v1575_v16, -inf  ;;  %v1738_v19 = vsel %vm763_vm3, %v1623_v17, -inf }
 0x678   : > { %1736 = vmax.xlane.f32.xlu1 %v1735_v18  ;;  %v3647_v20 = vpop.f32.mrf.mxu0  ;;  %1739 = vmax.xlane.f32.xlu0 %v1738_v19  ;;  %v3652_v21 = vpop.f32.mrf.mxu1 }
 0x67a   : > { %v1626_v22 = vpop.f32.mrf.mxu1  ;;  %v1674_v23 = vpop.f32.mrf.mxu0 }
 0x67b   : > { %v1741_v24 = vsel %vm763_vm3, %v1626_v22, -inf  ;;  %v1744_v25 = vsel %vm763_vm3, %v1674_v23, -inf }
 0x67c   : > { %1742 = vmax.xlane.f32.xlu0 %v1741_v24  ;;  %v3653_v26 = vpop.f32.mrf.mxu1  ;;  %1745 = vmax.xlane.f32.xlu1 %v1744_v25  ;;  %v3658_v27 = vpop.f32.mrf.mxu0 }
 0x67e   : > { %v1677_v28 = vpop.f32.mrf.mxu0  ;;  %v1725_v30 = vpop.f32.mrf.mxu1 }
 0x67f   : > { %v1750_v33 = vsel %vm763_vm3, %v1725_v30, -inf  ;;  %v1747_v37 = vsel %vm763_vm3, %v1677_v28, -inf }
 0x680   : > { %v3664_v39 = vpop.f32.mrf.mxu1  ;;  %1751 = vmax.xlane.f32.xlu1 %v1750_v33  ;;  %1748 = vmax.xlane.f32.xlu0 %v1747_v37  ;;  %v3659_v42 = vpop.f32.mrf.mxu0 }
 0x682   : > { %v1728_v43 = vpop.f32.mrf.mxu1 }
 0x683   : > { %v1753_v45 = vsel %vm763_vm3, %v1728_v43, -inf }
 0x684   : > { %v3665_v46 = vpop.f32.mrf.mxu1  ;;  %1754 = vmax.xlane.f32.xlu0 %v1753_v45 }
 0x691   : > { %1824 = vrot.lane.b32.xlu1 %v4199_v29, %s4077_s30 }
 0x695   : > { %1918 = vrot.lane.b32.xlu1 %v4201_v32, %s4077_s30 }
 0x699   : > { %1965 = vrot.lane.b32.xlu1 %v4207_v35, %s4077_s30 }
 0x69a   : > { %1871 = vrot.lane.b32.xlu0 %v4205_v34, %s4077_s30 }
 0x6fd   : > { %v1734_v47 = vpop.xlane.xlu0 %1733 }
 0x6fe   : > { %v1756_v48 = vsub.f32 %v1572_v10, %v1734_v47 }
 0x700   : > { %v1764_v49 = vmul.f32 1.442695, %v1756_v48 }
 0x701   : > { %v1737_v50 = vpop.xlane.xlu1 %1736  ;;  %v1740_v52 = vpop.xlane.xlu0 %1739 }
 0x702   : > { %3940 = vpow2.f32 %v1764_v49  ;;  %v1757_v53 = vsub.f32 %v1575_v16, %v1737_v50  ;;  %v1758_v54 = vsub.f32 %v1623_v17, %v1740_v52 }
 0x704   : > { %v1766_v57 = vmul.f32 1.442695, %v1757_v53  ;;  %v1768_v60 = vmul.f32 1.442695, %v1758_v54 }
 0x705   : > { %v1746_v62 = vpop.xlane.xlu1 %1745  ;;  %v1743_v2 = vpop.xlane.xlu0 %1742 }
 0x706   : > { %3942 = vpow2.f32 %v1766_v57  ;;  %v1760_v3 = vsub.f32 %v1674_v23, %v1746_v62  ;;  %v1759_v7 = vsub.f32 %v1626_v22, %v1743_v2 }
 0x707   : > { %3944 = vpow2.f32 %v1768_v60 }
 0x708   : > { %v1772_v8 = vmul.f32 1.442695, %v1760_v3  ;;  %v1770_v12 = vmul.f32 1.442695, %v1759_v7 }
 0x709   : > { %v1752_v13 = vpop.xlane.xlu1 %1751  ;;  %v1749_v15 = vpop.xlane.xlu0 %1748 }
 0x70a   : > { %3946 = vpow2.f32 %v1772_v8  ;;  %v1762_v10 = vsub.f32 %v1725_v30, %v1752_v13  ;;  %v1761_v18 = vsub.f32 %v1677_v28, %v1749_v15 }
 0x70b   : > { %3948 = vpow2.f32 %v1770_v12 }
 0x70c   : > { %v1776_v19 = vmul.f32 1.442695, %v1762_v10  ;;  %v1774_v20 = vmul.f32 1.442695, %v1761_v18 }
 0x70d   : > { %v1825_v16 = vpop.permute.xlu1 %1824  ;;  %v1755_v17 = vpop.xlane.xlu0 %1754 }
 0x70e   : > { %3950 = vpow2.f32 %v1776_v19  ;;  %v1763_v21 = vsub.f32 %v1728_v43, %v1755_v17  ;;  %3667 = vmatpush3.bf16.msra.mxu0 %v1825_v16 }
 0x70f   : > { %v3941_v24 = vpop.eup %3940  ;;  %3952 = vpow2.f32 %v1774_v20  ;;  %3678 = vmatprep.subr.bf16.mxu0 %v4068_v14 }
 0x710   : > { %v1778_v22 = vmul.f32 1.442695, %v1763_v21  ;;  %v1780_v23 = vsel %vm763_vm3, %v3941_v24, 0.0 }
 0x711   : > { %1781 = vadd.xlane.f32.xlu1 %v1780_v23  ;;  %v1872_v25 = vpop.permute.xlu0 %1871  ;;  %v1919_v50 = vpop.permute.xlu1 %1918 }
 0x712   : > { %3954 = vpow2.f32 %v1778_v22  ;;  %3673 = vmatpush3.bf16.msra.mxu1 %v1872_v25 }
 0x713   : > { %v3943_v26 = vpop.eup %3942  ;;  %3684 = vmatprep.subr.bf16.mxu1 %v4068_v14 }
 0x714   : > { %v3945_v27 = vpop.eup %3944  ;;  %v1783_v28 = vsel %vm763_vm3, %v3943_v26, 0.0 }
 0x715   : > { %1784 = vadd.xlane.f32.xlu0 %v1783_v28  ;;  %v1786_v30 = vsel %vm763_vm3, %v3945_v27, 0.0  ;;  %v1966_v52 = vpop.permute.xlu1 %1965 }
 0x716   : > { %1787 = vadd.xlane.f32.xlu1 %v1786_v30 }
 0x717   : > { %v3947_v33 = vpop.eup %3946 }
 0x718   : > { %v3949_v37 = vpop.eup %3948  ;;  %v1792_v39 = vsel %vm763_vm3, %v3947_v33, 0.0 }
 0x719   : > { %v1789_v42 = vsel %vm763_vm3, %v3949_v37, 0.0 }
 0x71a   : > { %1793 = vadd.xlane.f32.xlu1 %v1792_v39  ;;  %1790 = vadd.xlane.f32.xlu0 %v1789_v42 }
 0x71b   : > { %v4462_v43 = vpop.eup %3950 }
 0x71c   : > { %v3953_v45 = vpop.eup %3952  ;;  %v1798_v46 = vsel %vm763_vm3, %v4462_v43, 0.0 }
 0x71d   : > { %v1795_v47 = vsel %vm763_vm3, %v3953_v45, 0.0 }
 0x71e   : > { %1799 = vadd.xlane.f32.xlu1 %v1798_v46  ;;  %1796 = vadd.xlane.f32.xlu0 %v1795_v47 }
 0x71f   : > { %v3955_v48 = vpop.eup %3954 }
 0x720   : > { %v1801_v49 = vsel %vm763_vm3, %v3955_v48, 0.0 }
 0x722   : > { %1802 = vadd.xlane.f32.xlu0 %v1801_v49 }
 0x72f   : > { %2065 = vrot.lane.b32.xlu1 %v4205_v34, %s4078_s14 }
 0x733   : > { %2116 = vrot.lane.b32.xlu1 %v4201_v32, %s4078_s14 }
 0x737   : > { %2167 = vrot.lane.b32.xlu1 %v4207_v35, %s4078_s14 }
 0x738   : > { %2014 = vrot.lane.b32.xlu0 %v4199_v29, %s4078_s14 }
 0x73b   : > { %2165 = vrot.lane.b32.xlu1 %v4207_v35, %s4079_s16 }
 0x73c   : > { %2012 = vrot.lane.b32.xlu0 %v4199_v29, %s4079_s16 }
 0x740   : > { %2063 = vrot.lane.b32.xlu0 %v4205_v34, %s4079_s16 }
 0x744   : > { %2114 = vrot.lane.b32.xlu0 %v4201_v32, %s4079_s16 }
 0x79a   : > { %v1782_v53 = vpop.xlane.xlu1 %1781 }
 0x79b   : > { %3956 = vrcp.f32 %v1782_v53 }
 0x79e   : > { %v1785_v54 = vpop.xlane.xlu0 %1784 }
 0x79f   : > { %v1788_v57 = vpop.xlane.xlu1 %1787  ;;  %3958 = vrcp.f32 %v1785_v54 }
 0x7a0   : > { %3960 = vrcp.f32 %v1788_v57 }
 0x7a3   : > { %v1794_v60 = vpop.xlane.xlu1 %1793  ;;  %v1791_v62 = vpop.xlane.xlu0 %1790 }
 0x7a4   : > { %3962 = vrcp.f32 %v1791_v62 }
 0x7a5   : > { %3964 = vrcp.f32 %v1794_v60 }
 0x7a7   : > { %v1800_v2 = vpop.xlane.xlu1 %1799  ;;  %v1797_v3 = vpop.xlane.xlu0 %1796 }
 0x7a8   : > { %3966 = vrcp.f32 %v1797_v3  ;;  %v3957_v7 = vpop.eup %3956 }
 0x7a9   : > { %3968 = vrcp.f32 %v1800_v2  ;;  %v1812_v13 = vmul.f32 %v3957_v7, %v3941_v24 }
 0x7ab   : > { %v1803_v8 = vpop.xlane.xlu0 %1802 }
 0x7ac   : > { %v3959_v12 = vpop.eup %3958  ;;  %3970 = vrcp.f32 %v1803_v8 }
 0x7ad   : > { %v1813_v15 = vmul.f32 %v3959_v12, %v3943_v26  ;;  %v3961_v18 = vpop.eup %3960  ;;  %v2066_v26 = vpop.permute.xlu1 %2065 }
 0x7ae   : > { %v1814_v20 = vmul.f32 %v3961_v18, %v3945_v27  ;;  %v2071_v47 = vsel %vm565_vm2, %v2066_v26, 0 }
 0x7af   : > { %v1820_v10 = vpack.c.bf16 %v1813_v15, %v1812_v13  ;;  %v2015_v28 = vpop.permute.xlu0 %2014 }
 0x7b0   : > { %v2020_v42 = vsel %vm565_vm2, %v2015_v28, 0 }
 0x7b1   : > { %3669 = vmatmul.mubr.msk.bf16.vlgmr.msra.gmra.mxu0 %vm763_vm3, %v1820_v10  ;;  %v3963_v19 = vpop.eup %3962 }
 0x7b2   : > { %3679 = vmatpush3.bf16.msra.mxu0 %v1919_v50  ;;  %3680 = vmatprep.mubr.msk.bf16.mxu0 %vm4069_vm1, %v4068_v14  ;;  %v1815_v16 = vmul.f32 %v3963_v19, %v3949_v37  ;;  %v3965_v17 = vpop.eup %3964 }
 0x7b3   : > { %3690 = vmatprep.subr.bf16.mxu0 %v4068_v14  ;;  %v1816_v24 = vmul.f32 %v3965_v17, %v3947_v33  ;;  %v2013_v46 = vpop.permute.xlu0 %2012 }
 0x7b4   : > { %v1821_v21 = vpack.c.bf16 %v1815_v16, %v1814_v20 }
 0x7b5   : > { %v3967_v22 = vpop.eup %3966 }
 0x7b6   : > { %v3969_v23 = vpop.eup %3968  ;;  %3675 = vmatmul.mubr.msk.bf16.vlgmr.msra.gmra.mxu1 %vm763_vm3, %v1821_v21  ;;  %v1817_v25 = vmul.f32 %v3967_v22, %v3953_v45  ;;  %v2117_v45 = vpop.permute.xlu1 %2116 }
 0x7b7   : > { %3685 = vmatpush3.bf16.msra.mxu1 %v1966_v52  ;;  %3686 = vmatprep.mubr.msk.bf16.mxu1 %vm4069_vm1, %v4068_v14  ;;  %v1818_v27 = vmul.f32 %v3969_v23, %v4462_v43  ;;  %v2122_v43 = vsel %vm565_vm2, %v2117_v45, 0  ;;  %v2064_v49 = vpop.permute.xlu0 %2063 }
 0x7b8   : > { %v1822_v39 = vpack.c.bf16 %v1817_v25, %v1816_v24  ;;  %3696 = vmatprep.subr.bf16.mxu1 %v4068_v14 }
 0x7b9   : > { %v3971_v30 = vpop.eup %3970 }
 0x7ba   : > { %v1819_v37 = vmul.f32 %v3971_v30, %v3955_v48  ;;  %3681 = vmatmul.mubr.msk.bf16.vlgmr.msra.gmra.mxu0 %vm763_vm3, %v1822_v39  ;;  %v2168_v48 = vpop.permute.xlu1 %2167 }
 0x7bb   : > { %3691 = vmatpush3.bf16.xpose.msra.mxu0 %v2020_v42  ;;  %3692 = vmatprep.mubr.msk.bf16.mxu0 %vm4069_vm1, %v4068_v14  ;;  %v2173_v50 = vsel %vm565_vm2, %v2168_v48, 0  ;;  %v2115_v52 = vpop.permute.xlu0 %2114 }
 0x7bc   : > { %v1823_v33 = vpack.c.bf16 %v1819_v37, %v1818_v27  ;;  %3702 = vmatprep.subr.bf16.mxu0 %v4068_v14 }
 0x7be   : > { %3687 = vmatmul.mubr.msk.bf16.vlgmr.msra.gmra.mxu1 %vm763_vm3, %v1823_v33  ;;  %v2166_v53 = vpop.permute.xlu1 %2165 }
 0x7bf   : > { %3697 = vmatpush3.bf16.xpose.msra.mxu1 %v2071_v47  ;;  %3698 = vmatprep.mubr.msk.bf16.mxu1 %vm4069_vm1, %v4068_v14 }
 0x7c0   : > { %3708 = vmatprep.subr.bf16.mxu1 %v4068_v14 }
 0x7c2   : > { %3693 = vmatmul.mubr.msk.bf16.vlgmr.msra.gmra.mxu0 %vm565_vm2, %v2013_v46 }
 0x7c3   : > { %3703 = vmatpush3.bf16.xpose.msra.mxu0 %v2122_v43  ;;  %3704 = vmatprep.mubr.msk.bf16.mxu0 %vm4069_vm1, %v4068_v14 }
 0x7c4   : > { %3714 = vmatprep.subr.bf16.mxu0 %v4068_v14 }
 0x7c6   : > { %3699 = vmatmul.mubr.msk.bf16.vlgmr.msra.gmra.mxu1 %vm565_vm2, %v2064_v49 }
 0x7c7   : > { %3709 = vmatpush3.bf16.xpose.msra.mxu1 %v2173_v50  ;;  %3710 = vmatprep.mubr.msk.bf16.mxu1 %vm4069_vm1, %v4068_v14 }
 0x7c8   : > { %3720 = vmatprep.subr.bf16.mxu1 %v4068_v14 }
 0x7ca   : > { %3705 = vmatmul.mubr.msk.bf16.vlgmr.msra.gmra.mxu0 %vm565_vm2, %v2115_v52 }
 0x7cb   : > { %3716 = vmatprep.mubr.msk.bf16.mxu0 %vm4069_vm1, %v4068_v14 }
 0x7ce   : > { %3711 = vmatmul.mubr.msk.bf16.vlgmr.msra.gmra.mxu1 %vm565_vm2, %v2166_v53 }
 0x7cf   : > { %3722 = vmatprep.mubr.msk.bf16.mxu1 %vm4069_vm1, %v4068_v14 }
 0x871   : > { %v4511_v54 = vpop.f32.mrf.mxu0 }
 0x873   : > { %v3670_v57 = vpop.f32.mrf.mxu0 }
 0x875   : > { %v4513_v60 = vpop.f32.mrf.mxu0 }
 0x876   : > { %v3816_v62 = vpack.i.bf16 %v4513_v60, %v4511_v54  ;;  %v4517_v2 = vpop.f32.mrf.mxu1 }
 0x877   : > { %v3671_v3 = vpop.f32.mrf.mxu0 }
 0x878   : > { %v3676_v7 = vpop.f32.mrf.mxu1 }
 0x87a   : > { %v4519_v8 = vpop.f32.mrf.mxu1  ;;  %v4521_v12 = vpop.f32.mrf.mxu0 }
 0x87b   : > { %v3821_v13 = vpack.i.bf16 %v4519_v8, %v4517_v2 }
 0x87c   : > { %v3677_v15 = vpop.f32.mrf.mxu1  ;;  %v3682_v10 = vpop.f32.mrf.mxu0 }
 0x87e   : > { %v4525_v18 = vpop.f32.mrf.mxu0  ;;  %v4527_v19 = vpop.f32.mrf.mxu1 }
 0x87f   : > { %v3841_v20 = vpack.i.bf16 %v4525_v18, %v4521_v12 }
 0x880   : > { %v3683_v16 = vpop.f32.mrf.mxu0  ;;  %v3688_v17 = vpop.f32.mrf.mxu1 }
 0x882   : > { %v4531_v21 = vpop.f32.mrf.mxu1  ;;  %v2056_v22 = vpop.f32.mrf.mxu0 }
 0x883   : > { %v3851_v23 = vpack.i.bf16 %v4531_v21, %v4527_v19  ;;  %v2216_v24 = vsel %vm763_vm3, %v2056_v22, -inf }
 0x884   : > { %v3689_v25 = vpop.f32.mrf.mxu1  ;;  %2217 = vmax.xlane.f32.xlu0 %v2216_v24  ;;  %v3694_v26 = vpop.f32.mrf.mxu0 }
 0x886   : > { %v2059_v28 = vpop.f32.mrf.mxu0  ;;  %v2107_v30 = vpop.f32.mrf.mxu1 }
 0x887   : > { %v2219_v39 = vsel %vm763_vm3, %v2059_v28, -inf  ;;  %v2222_v27 = vsel %vm763_vm3, %v2107_v30, -inf }
 0x888   : > { %2220 = vmax.xlane.f32.xlu1 %v2219_v39  ;;  %v3695_v37 = vpop.f32.mrf.mxu0  ;;  %2223 = vmax.xlane.f32.xlu0 %v2222_v27  ;;  %v3700_v42 = vpop.f32.mrf.mxu1 }
 0x88a   : > { %v2110_v33 = vpop.f32.mrf.mxu1  ;;  %v2158_v45 = vpop.f32.mrf.mxu0 }
 0x88b   : > { %v2225_v46 = vsel %vm763_vm3, %v2110_v33, -inf  ;;  %v2228_v47 = vsel %vm763_vm3, %v2158_v45, -inf }
 0x88c   : > { %2226 = vmax.xlane.f32.xlu0 %v2225_v46  ;;  %v3701_v43 = vpop.f32.mrf.mxu1  ;;  %2229 = vmax.xlane.f32.xlu1 %v2228_v47  ;;  %v3706_v48 = vpop.f32.mrf.mxu0 }
 0x88e   : > { %v2161_v49 = vpop.f32.mrf.mxu0  ;;  %v2209_v50 = vpop.f32.mrf.mxu1 }
 0x88f   : > { %v2234_v52 = vsel %vm763_vm3, %v2209_v50, -inf  ;;  %v2231_v53 = vsel %vm763_vm3, %v2161_v49, -inf }
 0x890   : > { %v3712_v57 = vpop.f32.mrf.mxu1  ;;  %2235 = vmax.xlane.f32.xlu1 %v2234_v52  ;;  %2232 = vmax.xlane.f32.xlu0 %v2231_v53  ;;  %v3707_v3 = vpop.f32.mrf.mxu0 }
 0x892   : > { %v2212_v7 = vpop.f32.mrf.mxu1 }
 0x893   : > { %v2237_v15 = vsel %vm763_vm3, %v2212_v7, -inf }
 0x894   : > { %v3713_v10 = vpop.f32.mrf.mxu1  ;;  %2238 = vmax.xlane.f32.xlu0 %v2237_v15 }
 0x8a1   : > { %2308 = vrot.lane.b32.xlu1 %v4199_v29, %s4080_s17 }
 0x90d   : > { %v2218_v16 = vpop.xlane.xlu0 %2217 }
 0x90e   : > { %v2240_v17 = vsub.f32 %v2056_v22, %v2218_v16 }
 0x910   : > { %v2248_v24 = vmul.f32 1.442695, %v2240_v17 }
 0x911   : > { %v2221_v25 = vpop.xlane.xlu1 %2220  ;;  %v2224_v26 = vpop.xlane.xlu0 %2223 }
 0x912   : > { %3972 = vpow2.f32 %v2248_v24  ;;  %v2241_v39 = vsub.f32 %v2059_v28, %v2221_v25  ;;  %v2242_v27 = vsub.f32 %v2107_v30, %v2224_v26 }
 0x914   : > { %v2250_v37 = vmul.f32 1.442695, %v2241_v39  ;;  %v2252_v42 = vmul.f32 1.442695, %v2242_v27 }
 0x915   : > { %v2230_v46 = vpop.xlane.xlu1 %2229  ;;  %v2227_v47 = vpop.xlane.xlu0 %2226 }
 0x916   : > { %3974 = vpow2.f32 %v2250_v37  ;;  %v2244_v43 = vsub.f32 %v2158_v45, %v2230_v46  ;;  %v2243_v48 = vsub.f32 %v2110_v33, %v2227_v47 }
 0x917   : > { %3976 = vpow2.f32 %v2252_v42 }
 0x918   : > { %v2256_v52 = vmul.f32 1.442695, %v2244_v43  ;;  %v2254_v53 = vmul.f32 1.442695, %v2243_v48 }
 0x919   : > { %v2236_v57 = vpop.xlane.xlu1 %2235  ;;  %v2233_v29 = vpop.xlane.xlu0 %2232 }
 0x91a   : > { %3978 = vpow2.f32 %v2256_v52  ;;  %v2246_v22 = vsub.f32 %v2209_v50, %v2236_v57  ;;  %v2245_v3 = vsub.f32 %v2161_v49, %v2233_v29 }
 0x91b   : > { %3980 = vpow2.f32 %v2254_v53 }
 0x91c   : > { %v2260_v15 = vmul.f32 1.442695, %v2246_v22  ;;  %v2258_v10 = vmul.f32 1.442695, %v2245_v3 }
 0x91d   : > { %v2309_v28 = vpop.permute.xlu1 %2308  ;;  %v2239_v30 = vpop.xlane.xlu0 %2238 }
 0x91e   : > { %3982 = vpow2.f32 %v2260_v15  ;;  %v2247_v16 = vsub.f32 %v2212_v7, %v2239_v30  ;;  %3715 = vmatpush3.bf16.msra.mxu0 %v2309_v28 }
 0x91f   : > { %v3973_v17 = vpop.eup %3972  ;;  %3984 = vpow2.f32 %v2258_v10  ;;  %3726 = vmatprep.subr.bf16.mxu0 %v4068_v14 }
 0x920   : > { %v2262_v33 = vmul.f32 1.442695, %v2247_v16  ;;  %v2264_v45 = vsel %vm763_vm3, %v3973_v17, 0.0  ;;  %v3868_v16 = vld [vmem:[%s4924_s3 + $0x8] sm:$0xff]  }
 0x921   : > { %2265 = vadd.xlane.f32.xlu1 %v2264_v45 }
 0x922   : > { %3986 = vpow2.f32 %v2262_v33 }
 0x923   : > { %v3975_v24 = vpop.eup %3974 }
 0x924   : > { %v3977_v50 = vpop.eup %3976  ;;  %v2267_v49 = vsel %vm763_vm3, %v3975_v24, 0.0 }
 0x925   : > { %2268 = vadd.xlane.f32.xlu0 %v2267_v49  ;;  %v2270_v25 = vsel %vm763_vm3, %v3977_v50, 0.0 }
 0x926   : > { %2271 = vadd.xlane.f32.xlu1 %v2270_v25 }
 0x927   : > { %v4549_v26 = vpop.eup %3978 }
 0x928   : > { %v3981_v7 = vpop.eup %3980  ;;  %v2276_v39 = vsel %vm763_vm3, %v4549_v26, 0.0 }
 0x929   : > { %v2273_v27 = vsel %vm763_vm3, %v3981_v7, 0.0 }
 0x92a   : > { %2277 = vadd.xlane.f32.xlu1 %v2276_v39  ;;  %2274 = vadd.xlane.f32.xlu0 %v2273_v27 }
 0x92b   : > { %v4554_v37 = vpop.eup %3982 }
 0x92c   : > { %v3985_v42 = vpop.eup %3984  ;;  %v2282_v46 = vsel %vm763_vm3, %v4554_v37, 0.0 }
 0x92d   : > { %v2279_v47 = vsel %vm763_vm3, %v3985_v42, 0.0 }
 0x92e   : > { %2283 = vadd.xlane.f32.xlu1 %v2282_v46  ;;  %2280 = vadd.xlane.f32.xlu0 %v2279_v47 }
 0x92f   : > { %v3987_v43 = vpop.eup %3986 }
 0x930   : > { %v2285_v48 = vsel %vm763_vm3, %v3987_v43, 0.0 }
 0x932   : > { %2286 = vadd.xlane.f32.xlu0 %v2285_v48 }
 0x93f   : > { %2402 = vrot.lane.b32.xlu1 %v4201_v32, %s4080_s17 }
 0x943   : > { %2449 = vrot.lane.b32.xlu1 %v4207_v35, %s4080_s17 }
 0x947   : > { %3812 = vrot.lane.b32.xlu1 %v3811_v1, %s4081_s19 }
 0x948   : > { %2355 = vrot.lane.b32.xlu0 %v4205_v34, %s4080_s17 }
 0x94b   : > { %3822 = vrot.lane.b32.xlu1 %v3821_v13, %s4082_s20 }
 0x94c   : > { %3807 = vrot.lane.b32.xlu0 %v3806_v59, %s4081_s19 }
 0x94f   : > { %3832 = vrot.lane.b32.xlu1 %v3831_v11, %s4081_s19 }
 0x950   : > { %3817 = vrot.lane.b32.xlu0 %v3816_v62, %s4082_s20 }
 0x954   : > { %3827 = vrot.lane.b32.xlu0 %v3826_v6, %s4081_s19 }
 0x9aa   : > { %v2266_v32 = vpop.xlane.xlu1 %2265 }
 0x9ab   : > { %3988 = vrcp.f32 %v2266_v32 }
 0x9ae   : > { %v2269_v34 = vpop.xlane.xlu0 %2268 }
 0x9af   : > { %v2272_v35 = vpop.xlane.xlu1 %2271  ;;  %3990 = vrcp.f32 %v2269_v34 }
 0x9b0   : > { %3992 = vrcp.f32 %v2272_v35 }
 0x9b3   : > { %v2278_v55 = vpop.xlane.xlu1 %2277  ;;  %v2275_v58 = vpop.xlane.xlu0 %2274 }
 0x9b4   : > { %3994 = vrcp.f32 %v2275_v58 }
 0x9b5   : > { %3996 = vrcp.f32 %v2278_v55 }
 0x9b7   : > { %v2281_v59 = vpop.xlane.xlu0 %2280  ;;  %v2284_v61 = vpop.xlane.xlu1 %2283 }
 0x9b8   : > { %3998 = vrcp.f32 %v2281_v59  ;;  %v3989_v63 = vpop.eup %3988 }
 0x9b9   : > { %4000 = vrcp.f32 %v2284_v61  ;;  %v2296_v0 = vmul.f32 %v3989_v63, %v3973_v17 }
 0x9bb   : > { %v2287_v1 = vpop.xlane.xlu0 %2286  ;;  %v2403_v54 = vpop.permute.xlu1 %2402 }
 0x9bc   : > { %v3991_v5 = vpop.eup %3990  ;;  %4002 = vrcp.f32 %v2287_v1 }
 0x9bd   : > { %v2297_v4 = vmul.f32 %v3991_v5, %v3975_v24  ;;  %v3993_v11 = vpop.eup %3992 }
 0x9be   : > { %v2298_v62 = vmul.f32 %v3993_v11, %v3977_v50 }
 0x9bf   : > { %v2356_v6 = vpop.permute.xlu0 %2355  ;;  %v2304_v9 = vpack.c.bf16 %v2297_v4, %v2296_v0  ;;  %v2450_v53 = vpop.permute.xlu1 %2449 }
 0x9c0   : > { %3721 = vmatpush3.bf16.msra.mxu1 %v2356_v6 }
 0x9c1   : > { %3717 = vmatmul.mubr.msk.bf16.vlgmr.msra.gmra.mxu0 %vm763_vm3, %v2304_v9  ;;  %3732 = vmatprep.subr.bf16.mxu1 %v4068_v14  ;;  %v3995_v60 = vpop.eup %3994 }
 0x9c2   : > { %3727 = vmatpush3.bf16.msra.mxu0 %v2403_v54  ;;  %3728 = vmatprep.mubr.msk.bf16.mxu0 %vm4069_vm1, %v4068_v14  ;;  %v2299_v2 = vmul.f32 %v3995_v60, %v3981_v7  ;;  %v3997_v8 = vpop.eup %3996 }
 0x9c3   : > { %v2300_v57 = vmul.f32 %v3997_v8, %v4549_v26  ;;  %3738 = vmatprep.subr.bf16.mxu0 %v3868_v16  ;;  %v3808_v12 = vpop.permute.xlu0 %3807  ;;  %v3813_v18 = vpop.permute.xlu1 %3812 }
 0x9c4   : > { %v2305_v13 = vpack.c.bf16 %v2299_v2, %v2298_v62  ;;  %v3810_v59 = vunpack.i.h.bf16 %v3808_v12  ;;  %v3809_v61 = vunpack.i.l.bf16 %v3808_v12  ;;  %v3815_v4 = vunpack.i.h.bf16 %v3813_v18 }
 0x9c5   : > { %v3999_v52 = vpop.eup %3998  ;;  %v3814_v6 = vunpack.i.l.bf16 %v3813_v18 }
 0x9c6   : > { %3723 = vmatmul.mubr.msk.bf16.vlgmr.msra.gmra.mxu1 %vm763_vm3, %v2305_v13  ;;  %v2301_v29 = vmul.f32 %v3999_v52, %v3985_v42  ;;  %v4001_v22 = vpop.eup %4000  ;;  %v2593_v0 = vsel %vm565_vm2, %v4329_v36, %v3810_v59  ;;  %v2592_v19 = vsel %vm565_vm2, %v4327_v31, %v3809_v61  ;;  %v2595_v31 = vsel %vm565_vm2, %v4337_v44, %v3815_v4  ;;  %v4052_v61 = vld [vmem:[%s4176_s18] sm:$0xff] }
 0x9c7   : > { %3733 = vmatpush3.bf16.msra.mxu1 %v2450_v53  ;;  %3734 = vmatprep.mubr.msk.bf16.mxu1 %vm4069_vm1, %v4068_v14  ;;  %v2302_v10 = vmul.f32 %v4001_v22, %v4554_v37  ;;  %v3869_v14 = vld [vmem:[%s4924_s3] sm:$0xff]   ;;  %v3823_v55 = vpop.permute.xlu1 %3822  ;;  %v2594_v52 = vsel %vm565_vm2, %v4333_v40, %v3814_v6  ;;  %v4054_v6 = vld [vmem:[%s4176_s18 + $0x8] sm:$0xff] }
 0x9c8   : > { %v2306_v15 = vpack.c.bf16 %v2301_v29, %v2300_v57  ;;  %v3825_v2 = vunpack.i.h.bf16 %v3823_v55  ;;  %v3824_v8 = vunpack.i.l.bf16 %v3823_v55 }
 0x9c9   : > { %v4003_v3 = vpop.eup %4002 }
 0x9ca   : > { %3729 = vmatmul.mubr.msk.bf16.vlgmr.msra.gmra.mxu0 %vm763_vm3, %v2306_v15  ;;  %v2303_v28 = vmul.f32 %v4003_v3, %v3987_v43  ;;  %v2602_v15 = vsel %vm763_vm3, %v2594_v52, %v3824_v8 }
 0x9cb   : > { %3739 = vmatpush3.bf16.msra.mxu0 %v3868_v16  ;;  %v3833_v54 = vpop.permute.xlu1 %3832 }
 0x9cc   : > { %v2307_v30 = vpack.c.bf16 %v2303_v28, %v2302_v10  ;;  %3740 = vmatprep.subr.bf16.mxu0 %v3869_v14  ;;  %v2603_v10 = vsel %vm763_vm3, %v2595_v31, %v3825_v2  ;;  %v4056_v31 = vld [vmem:[%s4176_s18 + $0x20] sm:$0xff] }
 0x9ce   : > { %3735 = vmatmul.mubr.msk.bf16.vlgmr.msra.gmra.mxu1 %vm763_vm3, %v2307_v30 }
 0x9cf   : > { %3741 = vmatpush3.bf16.msra.mxu0 %v3869_v14  ;;  %v3834_v14 = vunpack.i.l.bf16 %v3833_v54 }
 0xa81   : > { %v2348_v17 = vpop.f32.mrf.mxu0 }
 0xa83   : > { %v3718_v33 = vpop.f32.mrf.mxu0 }
 0xa85   : > { %v2351_v45 = vpop.f32.mrf.mxu0 }
 0xa86   : > { %v3836_v24 = vpack.i.bf16 %v2351_v45, %v2348_v17  ;;  %v2395_v50 = vpop.f32.mrf.mxu1  ;;  %v3835_v17 = vunpack.i.h.bf16 %v3833_v54 }
 0xa87   : > { %v3719_v49 = vpop.f32.mrf.mxu0 }
 0xa88   : > { %3837 = vrot.lane.b32.xlu0 %v3836_v24, %s4083_s26  ;;  %v3724_v25 = vpop.f32.mrf.mxu1 }
 0xa8a   : > { %v2398_v26 = vpop.f32.mrf.mxu1  ;;  %v2442_v7 = vpop.f32.mrf.mxu0 }
 0xa8b   : > { %v3846_v39 = vpack.i.bf16 %v2398_v26, %v2395_v50 }
 0xa8c   : > { %3842 = vrot.lane.b32.xlu0 %v3841_v20, %s4082_s20  ;;  %v3725_v27 = vpop.f32.mrf.mxu1  ;;  %v3730_v37 = vpop.f32.mrf.mxu0 }
 0xa8d   : > { %3847 = vrot.lane.b32.xlu1 %v3846_v39, %s4083_s26  ;;  %v3818_v20 = vpop.permute.xlu0 %3817 }
 0xa8e   : > { %v2445_v42 = vpop.f32.mrf.mxu0  ;;  %v2489_v46 = vpop.f32.mrf.mxu1  ;;  %v3820_v63 = vunpack.i.h.bf16 %v3818_v20  ;;  %v3819_v1 = vunpack.i.l.bf16 %v3818_v20 }
 0xa8f   : > { %v3856_v47 = vpack.i.bf16 %v2445_v42, %v2442_v7 }
 0xa90   : > { %v3731_v43 = vpop.f32.mrf.mxu0  ;;  %v3736_v48 = vpop.f32.mrf.mxu1  ;;  %v2600_v9 = vsel %vm763_vm3, %v2592_v19, %v3819_v1  ;;  %v2601_v11 = vsel %vm763_vm3, %v2593_v0, %v3820_v63  ;;  %v4053_v0 = vld [vmem:[%s4176_s18 + $0x10] sm:$0xff] }
 0xa91   : > { %3857 = vrot.lane.b32.xlu0 %v3856_v47, %s4083_s26  ;;  %3852 = vrot.lane.b32.xlu1 %v3851_v23, %s4082_s20  ;;  %v3828_v58 = vpop.permute.xlu0 %3827 }
 0xa92   : > { %v2492_v32 = vpop.f32.mrf.mxu1  ;;  %v3830_v57 = vunpack.i.h.bf16 %v3828_v58  ;;  %v3829_v29 = vunpack.i.l.bf16 %v3828_v58 }
 0xa93   : > { %v3861_v34 = vpack.i.bf16 %v2492_v32, %v2489_v46 }
 0xa94   : > { %v3737_v35 = vpop.f32.mrf.mxu1  ;;  %v2597_v24 = vsel %vm565_vm2, %v4335_v41, %v3830_v57  ;;  %v2596_v50 = vsel %vm565_vm2, %v4331_v38, %v3829_v29  ;;  %v2599_v41 = vsel %vm565_vm2, %v4344_v56, %v3835_v17  ;;  %v2598_v38 = vsel %vm565_vm2, %v4341_v51, %v3834_v14  ;;  %v3415_v51 = vld [vmem:[%s4925_s4] ss:$0 sm:$0xff]  ;;  %v4057_v29 = vld [vmem:[%s4176_s18 + $0x30] sm:$0xff] }
 0xa95   : > { %3862 = vrot.lane.b32.xlu1 %v3861_v34, %s4083_s26 }
 0xafa   : > { %v3838_v5 = vpop.permute.xlu0 %3837 }
 0xafb   : > { %v3840_v21 = vunpack.i.h.bf16 %v3838_v5  ;;  %v3839_v23 = vunpack.i.l.bf16 %v3838_v5 }
 0xafd   : > { %v2609_v60 = vsel %vm2608_vm4, %v2600_v9, %v3839_v23  ;;  %v2610_v62 = vsel %vm2608_vm4, %v2601_v11, %v3840_v21  ;;  %v4055_v11 = vld [vmem:[%s4176_s18 + $0x18] sm:$0xff] }
 0xafe   : > { %v2617_v13 = vpack.c.bf16 %v2610_v62, %v2609_v60  ;;  %v3843_v36 = vpop.permute.xlu0 %3842 }
 0xaff   : > { %v3848_v53 = vpop.permute.xlu1 %3847  ;;  %v3845_v28 = vunpack.i.h.bf16 %v3843_v36  ;;  %v3844_v30 = vunpack.i.l.bf16 %v3843_v36 }
 0xb00   : > { %3742 = vmatprep.mubr.msk.bf16.mxu0 %vm480_vm0, %v2617_v13  ;;  %v3850_v22 = vunpack.i.h.bf16 %v3848_v53  ;;  %v3849_v3 = vunpack.i.l.bf16 %v3848_v53 }
 0xb01   : > { %v2604_v26 = vsel %vm763_vm3, %v2596_v50, %v3844_v30  ;;  %v2605_v7 = vsel %vm763_vm3, %v2597_v24, %v3845_v28  ;;  %v4058_v28 = vld [vmem:[%s4176_s18 + $0x28] sm:$0xff] }
 0xb02   : > { %v2612_v16 = vsel %vm2608_vm4, %v2603_v10, %v3850_v22  ;;  %v2611_v44 = vsel %vm2608_vm4, %v2602_v15, %v3849_v3 }
 0xb03   : > { %v2618_v40 = vpack.c.bf16 %v2612_v16, %v2611_v44  ;;  %v3853_v33 = vpop.permute.xlu1 %3852  ;;  %v3858_v45 = vpop.permute.xlu0 %3857  ;;  %v4059_v16 = vld [vmem:[%s4176_s18 + $0x38] sm:$0xff] }
 0xb04   : > { %v3860_v49 = vunpack.i.h.bf16 %v3858_v45  ;;  %v3859_v25 = vunpack.i.l.bf16 %v3858_v45  ;;  %v3855_v39 = vunpack.i.h.bf16 %v3853_v33  ;;  %v3854_v27 = vunpack.i.l.bf16 %v3853_v33 }
 0xb05   : > { %3743 = vmatmul.mubr.msk.bf16.vlgmr.msra.gmra.mxu0 %vm480_vm0, %v2618_v40 }
 0xb06   : > { %v2613_v37 = vsel %vm2608_vm4, %v2604_v26, %v3859_v25  ;;  %v2614_v42 = vsel %vm2608_vm4, %v2605_v7, %v3860_v49  ;;  %v2607_v32 = vsel %vm763_vm3, %v2599_v41, %v3855_v39  ;;  %v2606_v34 = vsel %vm763_vm3, %v2598_v38, %v3854_v27 }
 0xb07   : > { %v2619_v46 = vpack.c.bf16 %v2614_v42, %v2613_v37  ;;  %v3863_v47 = vpop.permute.xlu1 %3862 }
 0xb08   : > { %v3865_v43 = vunpack.i.h.bf16 %v3863_v47  ;;  %v3864_v48 = vunpack.i.l.bf16 %v3863_v47 }
 0xb09   : > { %3746 = vmatprep.mubr.msk.bf16.mxu0 %vm480_vm0, %v2619_v46 }
 0xb0a   : > { %v2616_v35 = vsel %vm2608_vm4, %v2607_v32, %v3865_v43  ;;  %v2615_v12 = vsel %vm2608_vm4, %v2606_v34, %v3864_v48 }
 0xb0b   : > { %v2620_v18 = vpack.c.bf16 %v2616_v35, %v2615_v12 }
 0xb0d   : > { %3747 = vmatmul.mubr.msk.bf16.gmra.mxu0 %vm480_vm0, %v2620_v18 }
 0xbc5   : > { %v3744_v56 = vpop.f32.mrf.mxu0 }
 0xbc6   : > { %v2699_v55 = vadd.f32 %v3744_v56, %v3415_v51 }
 0xbc7   : > { %v2690_v20 = vpop.f32.mrf.mxu0 }
 0xbc8   : > { %v2691_v58 = vadd.f32 %v3415_v51, %v2690_v20  ;;  %v2723_v19 = vadd.f32 %v4053_v0, %v2699_v55 }
 0xbc9   : > { %v3745_v59 = vpop.f32.mrf.mxu0 }
 0xbca   : > { %v2721_v63 = vadd.f32 %v4052_v61, %v2691_v58  ;;  %v2702_v1 = vadd.f32 %v3745_v59, %v3415_v51  ;;  %v2735_v13 = vsel %vm480_vm0, %v2723_v19, 0.0 }
 0xbcb   : > { %v2693_v5 = vpop.f32.mrf.mxu0 }
 0xbcc   : > { %v2694_v21 = vadd.f32 %v3415_v51, %v2693_v5  ;;  %v2729_v23 = vsel %vm480_vm0, %v2721_v63, 0.0  ;;  %v2724_v54 = vadd.f32 %v4055_v11, %v2702_v1  ;;  %v3870_v11 = vld [vmem:[%s4928_s7 + $0x8] sm:$0xff]  }
 0xbcd   : > { %v3748_v4 = vpop.f32.mrf.mxu0  ;;  %2730 = vadd.xlane.f32.xlu0 %v2729_v23  ;;  %3750 = vmatprep.subr.bf16.mxu1 %v3870_v11 }
 0xbce   : > { %v2722_v9 = vadd.f32 %v4054_v6, %v2694_v21  ;;  %v2715_v62 = vadd.f32 %v3748_v4, %v3415_v51  ;;  %v2738_v57 = vsel %vm480_vm0, %v2724_v54, 0.0  ;;  %3751 = vmatpush3.bf16.msra.mxu1 %v3870_v11  ;;  %v3872_v11 = vld [vmem:[%s4930_s9 + $0x18] sm:$0xff]  }
 0xbcf   : > { %v2706_v60 = vpop.f32.mrf.mxu0  ;;  %3762 = vmatprep.subr.bf16.mxu0 %v3872_v11 }
 0xbd0   : > { %v2707_v2 = vadd.f32 %v3415_v51, %v2706_v60  ;;  %v2732_v8 = vsel %vm480_vm0, %v2722_v9, 0.0  ;;  %v2727_v22 = vadd.f32 %v4057_v29, %v2715_v62  ;;  %3763 = vmatpush3.bf16.msra.mxu0 %v3872_v11 }
 0xbd1   : > { %v3749_v36 = vpop.f32.mrf.mxu0  ;;  %2733 = vadd.xlane.f32.xlu1 %v2732_v8  ;;  %2736 = vadd.xlane.f32.xlu0 %v2735_v13 }
 0xbd2   : > { %v2725_v52 = vadd.f32 %v4056_v31, %v2707_v2  ;;  %v2718_v3 = vadd.f32 %v3749_v36, %v3415_v51  ;;  %v2747_v17 = vsel %vm480_vm0, %v2727_v22, 0.0 }
 0xbd3   : > { %v2709_v53 = vpop.f32.mrf.mxu0 }
 0xbd4   : > { %v2710_v15 = vadd.f32 %v3415_v51, %v2709_v53  ;;  %v2741_v10 = vsel %vm480_vm0, %v2725_v52, 0.0  ;;  %v2728_v44 = vadd.f32 %v4059_v16, %v2718_v3 }
 0xbd5   : > { %2742 = vadd.xlane.f32.xlu1 %v2741_v10  ;;  %2739 = vadd.xlane.f32.xlu0 %v2738_v57 }
 0xbd6   : > { %v2726_v30 = vadd.f32 %v4058_v28, %v2710_v15  ;;  %v2750_v40 = vsel %vm480_vm0, %v2728_v44, 0.0 }
 0xbd8   : > { %v2744_v14 = vsel %vm480_vm0, %v2726_v30, 0.0 }
 0xbd9   : > { %2748 = vadd.xlane.f32.xlu1 %v2747_v17  ;;  %2745 = vadd.xlane.f32.xlu0 %v2744_v14 }
 0xbdd   : > { %2751 = vadd.xlane.f32.xlu0 %v2750_v40 }
 0xc56   : > { %v2731_v33 = vpop.xlane.xlu0 %2730 }
 0xc57   : > { %v2754_v45 = vmul.f32 0.03125, %v2731_v33 }
 0xc59   : > { %v4666_v24 = vsub.f32 %v2721_v63, %v2754_v45 }
 0xc5a   : > { %v2734_v50 = vpop.xlane.xlu1 %2733  ;;  %v2737_v49 = vpop.xlane.xlu0 %2736 }
 0xc5b   : > { %v2755_v25 = vmul.f32 0.03125, %v2734_v50  ;;  %v2756_v26 = vmul.f32 0.03125, %v2737_v49  ;;  %v2770_v7 = vmul.f32 %v4666_v24, %v4666_v24 }
 0xc5d   : > { %v4670_v39 = vsub.f32 %v2722_v9, %v2755_v25  ;;  %v4672_v27 = vsub.f32 %v2723_v19, %v2756_v26  ;;  %v2778_v37 = vsel %vm480_vm0, %v2770_v7, 0.0  ;;  %v3422_v25 = vld [vmem:[%s4926_s5] ss:$0 sm:$0xff] }
 0xc5e   : > { %v2743_v42 = vpop.xlane.xlu1 %2742  ;;  %2779 = vadd.xlane.f32.xlu1 %v2778_v37  ;;  %v2740_v46 = vpop.xlane.xlu0 %2739 }
 0xc5f   : > { %v2758_v47 = vmul.f32 0.03125, %v2743_v42  ;;  %v2757_v41 = vmul.f32 0.03125, %v2740_v46  ;;  %v2771_v38 = vmul.f32 %v4670_v39, %v4670_v39  ;;  %v2772_v43 = vmul.f32 %v4672_v27, %v4672_v27 }
 0xc61   : > { %v4679_v48 = vsub.f32 %v2725_v52, %v2758_v47  ;;  %v4681_v32 = vsub.f32 %v2724_v54, %v2757_v41  ;;  %v2781_v34 = vsel %vm480_vm0, %v2771_v38, 0.0  ;;  %v2784_v35 = vsel %vm480_vm0, %v2772_v43, 0.0  ;;  %v3871_v54 = vld [vmem:[%s4928_s7] sm:$0xff]  }
 0xc62   : > { %v2749_v12 = vpop.xlane.xlu1 %2748  ;;  %2782 = vadd.xlane.f32.xlu0 %v2781_v34  ;;  %2785 = vadd.xlane.f32.xlu1 %v2784_v35  ;;  %v2746_v18 = vpop.xlane.xlu0 %2745  ;;  %v3423_v47 = vld [vmem:[%s4927_s6] ss:$0 sm:$0xff] }
 0xc63   : > { %v2760_v56 = vmul.f32 0.03125, %v2749_v12  ;;  %v2759_v51 = vmul.f32 0.03125, %v2746_v18  ;;  %v2774_v20 = vmul.f32 %v4679_v48, %v4679_v48  ;;  %v2773_v55 = vmul.f32 %v4681_v32, %v4681_v32  ;;  %3752 = vmatprep.subr.bf16.mxu1 %v3871_v54 }
 0xc64   : > { %3753 = vmatpush3.bf16.msra.mxu1 %v3871_v54  ;;  %v3873_v54 = vld [vmem:[%s4930_s9 + $0x10] sm:$0xff]  }
 0xc65   : > { %v4689_v58 = vsub.f32 %v2727_v22, %v2760_v56  ;;  %v4691_v59 = vsub.f32 %v2726_v30, %v2759_v51  ;;  %v2790_v61 = vsel %vm480_vm0, %v2774_v20, 0.0  ;;  %v2787_v63 = vsel %vm480_vm0, %v2773_v55, 0.0  ;;  %3764 = vmatprep.subr.bf16.mxu0 %v3873_v54 }
 0xc66   : > { %2791 = vadd.xlane.f32.xlu1 %v2790_v61  ;;  %2788 = vadd.xlane.f32.xlu0 %v2787_v63  ;;  %v2752_v1 = vpop.xlane.xlu0 %2751 }
 0xc67   : > { %v2761_v5 = vmul.f32 0.03125, %v2752_v1  ;;  %v2776_v0 = vmul.f32 %v4689_v58, %v4689_v58  ;;  %v2775_v19 = vmul.f32 %v4691_v59, %v4691_v59  ;;  %3765 = vmatpush3.bf16.msra.mxu0 %v3873_v54 }
 0xc69   : > { %v4699_v21 = vsub.f32 %v2728_v44, %v2761_v5  ;;  %v2796_v23 = vsel %vm480_vm0, %v2776_v0, 0.0  ;;  %v2793_v4 = vsel %vm480_vm0, %v2775_v19, 0.0 }
 0xc6a   : > { %2797 = vadd.xlane.f32.xlu1 %v2796_v23  ;;  %2794 = vadd.xlane.f32.xlu0 %v2793_v4 }
 0xc6b   : > { %v2777_v6 = vmul.f32 %v4699_v21, %v4699_v21 }
 0xc6d   : > { %v2799_v9 = vsel %vm480_vm0, %v2777_v6, 0.0 }
 0xc6e   : > { %2800 = vadd.xlane.f32.xlu0 %v2799_v9 }
 0xce7   : > { %v2780_v60 = vpop.xlane.xlu1 %2779 }
 0xce8   : > { %v2802_v62 = vmul.f32 0.03125, %v2780_v60  ;;  %v3874_v60 = vld [vmem:[%s4930_s9 + $0x8] sm:$0xff]  }
 0xce9   : > { %3766 = vmatprep.subr.bf16.mxu0 %v3874_v60 }
 0xcea   : > { %v2810_v2 = vadd.f32 1e-05, %v2802_v62  ;;  %3767 = vmatpush3.bf16.msra.mxu0 %v3874_v60  ;;  %v3875_v62 = vld [vmem:[%s4930_s9] sm:$0xff]  }
 0xceb   : > { %v2786_v8 = vpop.xlane.xlu1 %2785  ;;  %v2783_v13 = vpop.xlane.xlu0 %2782  ;;  %3768 = vmatprep.subr.bf16.mxu0 %v3875_v62 }
 0xcec   : > { %4004 = vrsqrt.f32 %v2810_v2  ;;  %v2804_v36 = vmul.f32 0.03125, %v2786_v8  ;;  %v2803_v31 = vmul.f32 0.03125, %v2783_v13  ;;  %v3424_v2 = vld [vmem:[%s4929_s8] ss:$0 sm:$0xff] }
 0xcee   : > { %v2812_v52 = vadd.f32 1e-05, %v2804_v36  ;;  %v2811_v53 = vadd.f32 1e-05, %v2803_v31  ;;  %3769 = vmatpush3.bf16.msra.mxu0 %v3875_v62 }
 0xcef   : > { %v2792_v57 = vpop.xlane.xlu1 %2791  ;;  %v2789_v29 = vpop.xlane.xlu0 %2788 }
 0xcf0   : > { %4006 = vrsqrt.f32 %v2812_v52  ;;  %v2806_v22 = vmul.f32 0.03125, %v2792_v57  ;;  %v2805_v3 = vmul.f32 0.03125, %v2789_v29 }
 0xcf1   : > { %4008 = vrsqrt.f32 %v2811_v53 }
 0xcf2   : > { %v2814_v15 = vadd.f32 1e-05, %v2806_v22  ;;  %v2813_v10 = vadd.f32 1e-05, %v2805_v3 }
 0xcf3   : > { %v2798_v28 = vpop.xlane.xlu1 %2797  ;;  %v2795_v30 = vpop.xlane.xlu0 %2794 }
 0xcf4   : > { %4010 = vrsqrt.f32 %v2814_v15  ;;  %v2808_v16 = vmul.f32 0.03125, %v2798_v28  ;;  %v2807_v44 = vmul.f32 0.03125, %v2795_v30 }
 0xcf5   : > { %4012 = vrsqrt.f32 %v2813_v10 }
 0xcf6   : > { %v2816_v17 = vadd.f32 1e-05, %v2808_v16  ;;  %v2815_v14 = vadd.f32 1e-05, %v2807_v44 }
 0xcf7   : > { %v2801_v40 = vpop.xlane.xlu0 %2800 }
 0xcf8   : > { %4014 = vrsqrt.f32 %v2816_v17  ;;  %v2809_v33 = vmul.f32 0.03125, %v2801_v40 }
 0xcf9   : > { %v4005_v45 = vpop.eup %4004  ;;  %4016 = vrsqrt.f32 %v2815_v14 }
 0xcfa   : > { %v2817_v50 = vadd.f32 1e-05, %v2809_v33  ;;  %v2826_v49 = vmul.f32 %v4005_v45, %v4666_v24 }
 0xcfc   : > { %4018 = vrsqrt.f32 %v2817_v50  ;;  %v2841_v37 = vmul.f32 %v3422_v25, %v2826_v49 }
 0xcfd   : > { %v4007_v26 = vpop.eup %4006 }
 0xcfe   : > { %v4009_v7 = vpop.eup %4008  ;;  %v2828_v42 = vmul.f32 %v4007_v26, %v4672_v27  ;;  %v4721_v24 = vadd.f32 %v3423_v47, %v2841_v37 }
 0xcff   : > { %v2827_v46 = vmul.f32 %v4009_v7, %v4670_v39 }
 0xd00   : > { %v2843_v12 = vmul.f32 %v3422_v25, %v2828_v42 }
 0xd01   : > { %v4011_v41 = vpop.eup %4010  ;;  %v2842_v38 = vmul.f32 %v3422_v25, %v2827_v46 }
 0xd02   : > { %v4013_v43 = vpop.eup %4012  ;;  %v2830_v18 = vmul.f32 %v4011_v41, %v4679_v48  ;;  %v4731_v55 = vadd.f32 %v3423_v47, %v2843_v12 }
 0xd03   : > { %v2829_v34 = vmul.f32 %v4013_v43, %v4681_v32  ;;  %v4724_v35 = vadd.f32 %v3423_v47, %v2842_v38 }
 0xd04   : > { %v2845_v63 = vmul.f32 %v3422_v25, %v2830_v18 }
 0xd05   : > { %v4015_v56 = vpop.eup %4014  ;;  %v2864_v39 = vpack.c.bf16 %v4724_v35, %v4721_v24  ;;  %v2844_v27 = vmul.f32 %v3422_v25, %v2829_v34 }
 0xd06   : > { %v4017_v51 = vpop.eup %4016  ;;  %v2832_v20 = vmul.f32 %v4015_v56, %v4689_v58  ;;  %v4740_v58 = vadd.f32 %v3423_v47, %v2845_v63 }
 0xd07   : > { %3754 = vmatprep.mubr.msk.bf16.mxu1 %vm480_vm0, %v2864_v39  ;;  %v4733_v61 = vadd.f32 %v3423_v47, %v2844_v27  ;;  %v2831_v32 = vmul.f32 %v4017_v51, %v4691_v59 }
 0xd08   : > { %v2847_v19 = vmul.f32 %v3422_v25, %v2832_v20 }
 0xd09   : > { %v4019_v1 = vpop.eup %4018  ;;  %v2865_v48 = vpack.c.bf16 %v4733_v61, %v4731_v55  ;;  %v2846_v5 = vmul.f32 %v3422_v25, %v2831_v32 }
 0xd0a   : > { %v2833_v0 = vmul.f32 %v4019_v1, %v4699_v21  ;;  %v4746_v59 = vadd.f32 %v3423_v47, %v2847_v19 }
 0xd0b   : > { %3755 = vmatmul.mubr.msk.bf16.vlgmr.msra.gmra.mxu1 %vm480_vm0, %v2865_v48  ;;  %v4742_v23 = vadd.f32 %v3423_v47, %v2846_v5 }
 0xd0c   : > { %v2848_v4 = vmul.f32 %v3422_v25, %v2833_v0 }
 0xd0d   : > { %v2866_v6 = vpack.c.bf16 %v4742_v23, %v4740_v58 }
 0xd0e   : > { %v4748_v9 = vadd.f32 %v3423_v47, %v2848_v4 }
 0xd0f   : > { %3758 = vmatprep.mubr.msk.bf16.mxu1 %vm480_vm0, %v2866_v6 }
 0xd10   : > { %v2867_v21 = vpack.c.bf16 %v4748_v9, %v4746_v59 }
 0xd13   : > { %3759 = vmatmul.mubr.msk.bf16.gmra.mxu1 %vm480_vm0, %v2867_v21 }
 0xdcb   : > { %v3756_v8 = vpop.f32.mrf.mxu1 }
 0xdcc   : > { %v4769_v13 = vadd.f32 %v3756_v8, %v3424_v2 }
 0xdcd   : > { %v2937_v36 = vpop.f32.mrf.mxu1 }
 0xdce   : > { %v2970_v31 = vmul.f32 %v4769_v13, %v4769_v13  ;;  %v4773_v52 = vadd.f32 %v3424_v2, %v2937_v36 }
 0xdcf   : > { %v3757_v53 = vpop.f32.mrf.mxu1 }
 0xdd0   : > { %v2978_v57 = vmul.f32 %v2970_v31, %v4769_v13  ;;  %v2968_v29 = vmul.f32 %v4773_v52, %v4773_v52  ;;  %v4778_v22 = vadd.f32 %v3757_v53, %v3424_v2 }
 0xdd1   : > { %v2940_v3 = vpop.f32.mrf.mxu1 }
 0xdd2   : > { %v2986_v15 = vmul.f32 0.044715, %v2978_v57  ;;  %v2976_v10 = vmul.f32 %v2968_v29, %v4773_v52  ;;  %v2971_v28 = vmul.f32 %v4778_v22, %v4778_v22  ;;  %v4783_v30 = vadd.f32 %v3424_v2, %v2940_v3 }
 0xdd3   : > { %v3760_v16 = vpop.f32.mrf.mxu1 }
 0xdd4   : > { %v2994_v44 = vadd.f32 %v2986_v15, %v4769_v13  ;;  %v2984_v17 = vmul.f32 0.044715, %v2976_v10  ;;  %v2979_v14 = vmul.f32 %v2971_v28, %v4778_v22  ;;  %v2969_v40 = vmul.f32 %v4783_v30, %v4783_v30 }
 0xdd5   : > { %v4789_v33 = vadd.f32 %v3760_v16, %v3424_v2  ;;  %v2953_v45 = vpop.f32.mrf.mxu1 }
 0xdd6   : > { %v3002_v50 = vmul.f32 0.7978846, %v2994_v44  ;;  %v2992_v49 = vadd.f32 %v2984_v17, %v4773_v52  ;;  %v2987_v25 = vmul.f32 0.044715, %v2979_v14  ;;  %v2977_v26 = vmul.f32 %v2969_v40, %v4783_v30 }
 0xdd7   : > { %v2974_v7 = vmul.f32 %v4789_v33, %v4789_v33  ;;  %v4795_v37 = vadd.f32 %v3424_v2, %v2953_v45  ;;  %v3761_v42 = vpop.f32.mrf.mxu1 }
 0xdd8   : > { %v3000_v46 = vmul.f32 0.7978846, %v2992_v49  ;;  %v2995_v47 = vadd.f32 %v2987_v25, %v4778_v22  ;;  %v2985_v41 = vmul.f32 0.044715, %v2977_v26  ;;  %4020 = vtanh.f32 %v3002_v50 }
 0xdd9   : > { %v2982_v38 = vmul.f32 %v2974_v7, %v4789_v33  ;;  %v2972_v43 = vmul.f32 %v4795_v37, %v4795_v37  ;;  %v4801_v34 = vadd.f32 %v3761_v42, %v3424_v2  ;;  %v2956_v12 = vpop.f32.mrf.mxu1 }
 0xdda   : > { %4022 = vtanh.f32 %v3000_v46  ;;  %v3003_v18 = vmul.f32 0.7978846, %v2995_v47  ;;  %v2993_v56 = vadd.f32 %v2985_v41, %v4783_v30  ;;  %v2957_v39 = vadd.f32 %v3424_v2, %v2956_v12 }
 0xddb   : > { %v2990_v27 = vmul.f32 0.044715, %v2982_v38  ;;  %v2980_v51 = vmul.f32 %v2972_v43, %v4795_v37  ;;  %v2975_v20 = vmul.f32 %v4801_v34, %v4801_v34 }
 0xddc   : > { %4024 = vtanh.f32 %v3003_v18  ;;  %v3001_v32 = vmul.f32 0.7978846, %v2993_v56  ;;  %v2973_v63 = vmul.f32 %v2957_v39, %v2957_v39 }
 0xddd   : > { %v2998_v1 = vadd.f32 %v2990_v27, %v4789_v33  ;;  %v2988_v48 = vmul.f32 0.044715, %v2980_v51  ;;  %v2983_v5 = vmul.f32 %v2975_v20, %v4801_v34  ;;  %v3431_v20 = vld [vmem:[%s4931_s10] ss:$0 sm:$0xff] }
 0xdde   : > { %4026 = vtanh.f32 %v3001_v32  ;;  %v2981_v0 = vmul.f32 %v2973_v63, %v2957_v39 }
 0xddf   : > { %v3006_v19 = vmul.f32 0.7978846, %v2998_v1  ;;  %v2996_v4 = vadd.f32 %v2988_v48, %v4795_v37  ;;  %v2991_v6 = vmul.f32 0.044715, %v2983_v5 }
 0xde0   : > { %v2989_v21 = vmul.f32 0.044715, %v2981_v0 }
 0xde1   : > { %4028 = vtanh.f32 %v3006_v19  ;;  %v3004_v11 = vmul.f32 0.7978846, %v2996_v4  ;;  %v2999_v54 = vadd.f32 %v2991_v6, %v4801_v34 }
 0xde2   : > { %v2997_v60 = vadd.f32 %v2989_v21, %v2957_v39 }
 0xde3   : > { %4030 = vtanh.f32 %v3004_v11  ;;  %v3007_v62 = vmul.f32 0.7978846, %v2999_v54 }
 0xde4   : > { %v3005_v2 = vmul.f32 0.7978846, %v2997_v60 }
 0xde5   : > { %4032 = vtanh.f32 %v3007_v62  ;;  %v4021_v8 = vpop.eup %4020 }
 0xde6   : > { %4034 = vtanh.f32 %v3005_v2  ;;  %v3018_v57 = vadd.f32 1.0, %v4021_v8 }
 0xde7   : > { %v4023_v36 = vpop.eup %4022 }
 0xde8   : > { %v3016_v31 = vadd.f32 1.0, %v4023_v36  ;;  %v3026_v16 = vmul.f32 0.5, %v3018_v57 }
 0xde9   : > { %v4025_v53 = vpop.eup %4024 }
 0xdea   : > { %v3019_v29 = vadd.f32 1.0, %v4025_v53  ;;  %v3024_v15 = vmul.f32 0.5, %v3016_v31  ;;  %v3034_v49 = vmul.f32 %v3026_v16, %v4769_v13 }
 0xdeb   : > { %v4027_v3 = vpop.eup %4026 }
 0xdec   : > { %v3027_v10 = vmul.f32 0.5, %v3019_v29  ;;  %v3017_v28 = vadd.f32 1.0, %v4027_v3  ;;  %v3032_v45 = vmul.f32 %v3024_v15, %v4773_v52 }
 0xdee   : > { %v4029_v44 = vpop.eup %4028  ;;  %v3025_v17 = vmul.f32 0.5, %v3017_v28  ;;  %v3035_v14 = vmul.f32 %v3027_v10, %v4778_v22 }
 0xdef   : > { %v3022_v25 = vadd.f32 1.0, %v4029_v44 }
 0xdf0   : > { %v4031_v40 = vpop.eup %4030  ;;  %v3033_v50 = vmul.f32 %v3025_v17, %v4783_v30  ;;  %v3041_v47 = vpack.c.bf16 %v3035_v14, %v3034_v49 }
 0xdf1   : > { %v3020_v26 = vadd.f32 1.0, %v4031_v40  ;;  %v3030_v22 = vmul.f32 0.5, %v3022_v25 }
 0xdf2   : > { %v4033_v7 = vpop.eup %4032  ;;  %v3040_v42 = vpack.c.bf16 %v3033_v50, %v3032_v45 }
 0xdf3   : > { %v4035_v46 = vpop.eup %4034  ;;  %v3023_v41 = vadd.f32 1.0, %v4033_v7  ;;  %v3028_v38 = vmul.f32 0.5, %v3020_v26  ;;  %v3038_v56 = vmul.f32 %v3030_v22, %v4789_v33 }
 0xdf4   : > { %v3021_v43 = vadd.f32 1.0, %v4035_v46  ;;  %3770 = vmatprep.mubr.msk.bf16.mxu0 %vm3083_vm5, %v3040_v42 }
 0xdf5   : > { %v3031_v12 = vmul.f32 0.5, %v3023_v41  ;;  %3771 = vmatmul.mubr.msk.bf16.vlgmr.msra.gmra.mxu0 %vm3083_vm5, %v3041_v47  ;;  %v3036_v13 = vmul.f32 %v3028_v38, %v4795_v37 }
 0xdf6   : > { %v3029_v52 = vmul.f32 0.5, %v3021_v43 }
 0xdf7   : > { %v3039_v30 = vmul.f32 %v3031_v12, %v4801_v34 }
 0xdf8   : > { %v3037_v18 = vmul.f32 %v3029_v52, %v2957_v39 }
 0xdf9   : > { %v3043_v51 = vpack.c.bf16 %v3039_v30, %v3038_v56 }
 0xdfa   : > { %v3042_v27 = vpack.c.bf16 %v3037_v18, %v3036_v13 }
 0xdfc   : > { %3774 = vmatprep.mubr.msk.bf16.mxu0 %vm3083_vm5, %v3042_v27 }
 0xdfd   : > { %3775 = vmatmul.mubr.msk.bf16.gmra.mxu0 %vm3083_vm5, %v3043_v51 }
 0xeb5   : > { %v3772_v32 = vpop.f32.mrf.mxu0 }
 0xeb6   : > { %v3139_v63 = vadd.f32 %v3772_v32, %v3431_v20 }
 0xeb7   : > { %v3130_v1 = vpop.f32.mrf.mxu0 }
 0xeb8   : > { %v3163_v34 = vadd.f32 %v3139_v63, %v4731_v55  ;;  %v3131_v48 = vadd.f32 %v3431_v20, %v3130_v1 }
 0xeb9   : > { %v3773_v37 = vpop.f32.mrf.mxu0 }
 0xeba   : > { %v3161_v39 = vadd.f32 %v3131_v48, %v4721_v24  ;;  %v3142_v33 = vadd.f32 %v3773_v37, %v3431_v20  ;;  %v3175_v5 = vsel %vm480_vm0, %v3163_v34, 0.0 }
 0xebb   : > { %3176 = vadd.xlane.f32.xlu1 %v3175_v5  ;;  %v3133_v0 = vpop.f32.mrf.mxu0 }
 0xebc   : > { %v3164_v19 = vadd.f32 %v3142_v33, %v4733_v61  ;;  %v3134_v4 = vadd.f32 %v3431_v20, %v3133_v0  ;;  %v3169_v54 = vsel %vm480_vm0, %v3161_v39, 0.0 }
 0xebd   : > { %v3776_v6 = vpop.f32.mrf.mxu0 }
 0xebe   : > { %v3162_v21 = vadd.f32 %v3134_v4, %v4724_v35  ;;  %v3178_v11 = vsel %vm480_vm0, %v3164_v19, 0.0  ;;  %v3155_v60 = vadd.f32 %v3776_v6, %v3431_v20 }
 0xebf   : > { %3179 = vadd.xlane.f32.xlu0 %v3178_v11  ;;  %3170 = vadd.xlane.f32.xlu1 %v3169_v54  ;;  %v3146_v55 = vpop.f32.mrf.mxu0 }
 0xec0   : > { %v3147_v24 = vadd.f32 %v3431_v20, %v3146_v55  ;;  %v3172_v8 = vsel %vm480_vm0, %v3162_v21, 0.0  ;;  %v3167_v36 = vadd.f32 %v3155_v60, %v4746_v59 }
 0xec1   : > { %v3777_v62 = vpop.f32.mrf.mxu0 }
 0xec2   : > { %v3165_v2 = vadd.f32 %v3147_v24, %v4740_v58  ;;  %v3158_v31 = vadd.f32 %v3777_v62, %v3431_v20  ;;  %v3187_v15 = vsel %vm480_vm0, %v3167_v36, 0.0 }
 0xec3   : > { %3173 = vadd.xlane.f32.xlu0 %v3172_v8  ;;  %v3149_v61 = vpop.f32.mrf.mxu0 }
 0xec4   : > { %v3150_v35 = vadd.f32 %v3431_v20, %v3149_v61  ;;  %v3181_v53 = vsel %vm480_vm0, %v3165_v2, 0.0  ;;  %v3168_v29 = vadd.f32 %v3158_v31, %v4748_v9 }
 0xec5   : > { %3182 = vadd.xlane.f32.xlu1 %v3181_v53 }
 0xec6   : > { %v3166_v57 = vadd.f32 %v3150_v35, %v4742_v23  ;;  %v3190_v58 = vsel %vm480_vm0, %v3168_v29, 0.0 }
 0xec8   : > { %v3184_v3 = vsel %vm480_vm0, %v3166_v57, 0.0 }
 0xec9   : > { %3185 = vadd.xlane.f32.xlu0 %v3184_v3  ;;  %3188 = vadd.xlane.f32.xlu1 %v3187_v15  ;;  %v3440_v15 = vld [vmem:[%s4932_s11] ss:$0 sm:$0xff] }
 0xecd   : > { %3191 = vadd.xlane.f32.xlu0 %v3190_v58 }
 0xf44   : > { %v3177_v10 = vpop.xlane.xlu1 %3176 }
 0xf45   : > { %v3195_v59 = vmul.f32 0.03125, %v3177_v10 }
 0xf47   : > { %v4841_v28 = vsub.f32 %v3163_v34, %v3195_v59 }
 0xf48   : > { %v3171_v16 = vpop.xlane.xlu1 %3170  ;;  %v3180_v44 = vpop.xlane.xlu0 %3179 }
 0xf49   : > { %v3193_v17 = vmul.f32 0.03125, %v3171_v16  ;;  %v3196_v14 = vmul.f32 0.03125, %v3180_v44  ;;  %v3211_v23 = vmul.f32 %v4841_v28, %v4841_v28  ;;  %v3441_v16 = vld [vmem:[%s4933_s12] ss:$0 sm:$0xff] }
 0xf4b   : > { %v4845_v9 = vsub.f32 %v3161_v39, %v3193_v17  ;;  %v4847_v40 = vsub.f32 %v3164_v19, %v3196_v14  ;;  %v3223_v45 = vsel %vm480_vm0, %v3211_v23, 0.0 }
 0xf4c   : > { %3224 = vadd.xlane.f32.xlu1 %v3223_v45  ;;  %v3174_v50 = vpop.xlane.xlu0 %3173 }
 0xf4d   : > { %v3194_v49 = vmul.f32 0.03125, %v3174_v50  ;;  %v3209_v25 = vmul.f32 %v4845_v9, %v4845_v9  ;;  %v3212_v26 = vmul.f32 %v4847_v40, %v4847_v40 }
 0xf4e   : > { %v3183_v7 = vpop.xlane.xlu1 %3182 }
 0xf4f   : > { %v4854_v42 = vsub.f32 %v3162_v21, %v3194_v49  ;;  %v3197_v46 = vmul.f32 0.03125, %v3183_v7  ;;  %v3217_v47 = vsel %vm480_vm0, %v3209_v25, 0.0  ;;  %v3226_v41 = vsel %vm480_vm0, %v3212_v26, 0.0 }
 0xf50   : > { %3218 = vadd.xlane.f32.xlu1 %v3217_v47  ;;  %3227 = vadd.xlane.f32.xlu0 %v3226_v41 }
 0xf51   : > { %v4858_v38 = vsub.f32 %v3165_v2, %v3197_v46  ;;  %v3210_v43 = vmul.f32 %v4854_v42, %v4854_v42 }
 0xf52   : > { %v3189_v22 = vpop.xlane.xlu1 %3188  ;;  %v3186_v12 = vpop.xlane.xlu0 %3185 }
 0xf53   : > { %v3199_v52 = vmul.f32 0.03125, %v3189_v22  ;;  %v3198_v30 = vmul.f32 0.03125, %v3186_v12  ;;  %v3220_v13 = vsel %vm480_vm0, %v3210_v43, 0.0  ;;  %v3213_v18 = vmul.f32 %v4858_v38, %v4858_v38 }
 0xf54   : > { %3221 = vadd.xlane.f32.xlu0 %v3220_v13 }
 0xf55   : > { %v4865_v56 = vsub.f32 %v3167_v36, %v3199_v52  ;;  %v4867_v27 = vsub.f32 %v3166_v57, %v3198_v30  ;;  %v3229_v51 = vsel %vm480_vm0, %v3213_v18, 0.0 }
 0xf56   : > { %3230 = vadd.xlane.f32.xlu1 %v3229_v51  ;;  %v3192_v20 = vpop.xlane.xlu0 %3191 }
 0xf57   : > { %v3200_v32 = vmul.f32 0.03125, %v3192_v20  ;;  %v3215_v63 = vmul.f32 %v4865_v56, %v4865_v56  ;;  %v3214_v1 = vmul.f32 %v4867_v27, %v4867_v27 }
 0xf59   : > { %v4874_v34 = vsub.f32 %v3168_v29, %v3200_v32  ;;  %v3235_v48 = vsel %vm480_vm0, %v3215_v63, 0.0  ;;  %v3232_v37 = vsel %vm480_vm0, %v3214_v1, 0.0 }
 0xf5a   : > { %3236 = vadd.xlane.f32.xlu1 %v3235_v48  ;;  %3233 = vadd.xlane.f32.xlu0 %v3232_v37 }
 0xf5b   : > { %v3216_v39 = vmul.f32 %v4874_v34, %v4874_v34 }
 0xf5d   : > { %v3238_v33 = vsel %vm480_vm0, %v3216_v39, 0.0 }
 0xf5e   : > { %3239 = vadd.xlane.f32.xlu0 %v3238_v33 }
 0xfd5   : > { %v3225_v5 = vpop.xlane.xlu1 %3224 }
 0xfd6   : > { %v3243_v0 = vmul.f32 0.03125, %v3225_v5 }
 0xfd8   : > { %v3251_v19 = vadd.f32 1e-05, %v3243_v0 }
 0xfd9   : > { %v3219_v4 = vpop.xlane.xlu1 %3218  ;;  %v3228_v6 = vpop.xlane.xlu0 %3227 }
 0xfda   : > { %4036 = vrsqrt.f32 %v3251_v19  ;;  %v3241_v21 = vmul.f32 0.03125, %v3219_v4  ;;  %v3244_v11 = vmul.f32 0.03125, %v3228_v6 }
 0xfdc   : > { %v3249_v54 = vadd.f32 1e-05, %v3241_v21  ;;  %v3252_v55 = vadd.f32 1e-05, %v3244_v11 }
 0xfdd   : > { %v3222_v60 = vpop.xlane.xlu0 %3221 }
 0xfde   : > { %4038 = vrsqrt.f32 %v3249_v54  ;;  %v3242_v24 = vmul.f32 0.03125, %v3222_v60 }
 0xfdf   : > { %4040 = vrsqrt.f32 %v3252_v55  ;;  %v3231_v62 = vpop.xlane.xlu1 %3230 }
 0xfe0   : > { %v3250_v2 = vadd.f32 1e-05, %v3242_v24  ;;  %v3245_v8 = vmul.f32 0.03125, %v3231_v62 }
 0xfe2   : > { %4042 = vrsqrt.f32 %v3250_v2  ;;  %v3253_v61 = vadd.f32 1e-05, %v3245_v8 }
 0xfe3   : > { %v3237_v36 = vpop.xlane.xlu1 %3236  ;;  %v3234_v31 = vpop.xlane.xlu0 %3233 }
 0xfe4   : > { %4044 = vrsqrt.f32 %v3253_v61  ;;  %v3247_v35 = vmul.f32 0.03125, %v3237_v36  ;;  %v3246_v53 = vmul.f32 0.03125, %v3234_v31 }
 0xfe6   : > { %v3255_v57 = vadd.f32 1e-05, %v3247_v35  ;;  %v3254_v29 = vadd.f32 1e-05, %v3246_v53 }
 0xfe7   : > { %v4037_v3 = vpop.eup %4036  ;;  %v3240_v58 = vpop.xlane.xlu0 %3239 }
 0xfe8   : > { %v3267_v10 = vmul.f32 %v4037_v3, %v4841_v28  ;;  %4046 = vrsqrt.f32 %v3255_v57  ;;  %v3248_v59 = vmul.f32 0.03125, %v3240_v58 }
 0xfe9   : > { %4048 = vrsqrt.f32 %v3254_v29 }
 0xfea   : > { %v3282_v44 = vmul.f32 %v3440_v15, %v3267_v10  ;;  %v3256_v17 = vadd.f32 1e-05, %v3248_v59 }
 0xfeb   : > { %v4039_v14 = vpop.eup %4038 }
 0xfec   : > { %v4041_v23 = vpop.eup %4040  ;;  %v3297_v28 = vadd.f32 %v3441_v16, %v3282_v44  ;;  %v3265_v45 = vmul.f32 %v4039_v14, %v4845_v9  ;;  %4050 = vrsqrt.f32 %v3256_v17 }
 0xfed   : > { %v3268_v50 = vmul.f32 %v4041_v23, %v4847_v40 }
 0xfee   : > { %3305 = vst.msk [vmem:[%s4893_s27 + $0x10] sm:$0xff] %vm480_vm0, %v3297_v28  ;;  %v3280_v49 = vmul.f32 %v3440_v15, %v3265_v45 }
 0xfef   : > { %v4043_v25 = vpop.eup %4042  ;;  %v3283_v26 = vmul.f32 %v3440_v15, %v3268_v50 }
 0xff0   : > { %v3295_v7 = vadd.f32 %v3441_v16, %v3280_v49  ;;  %v3266_v46 = vmul.f32 %v4043_v25, %v4854_v42 }
 0xff1   : > { %v4045_v47 = vpop.eup %4044  ;;  %v3298_v41 = vadd.f32 %v3441_v16, %v3283_v26 }
 0xff2   : > { %3303 = vst.msk [vmem:[%s4893_s27] sm:$0xff] %vm480_vm0, %v3295_v7  ;;  %v3281_v43 = vmul.f32 %v3440_v15, %v3266_v46  ;;  %v3269_v9 = vmul.f32 %v4045_v47, %v4858_v38 }
 0xff3   : > { %3306 = vst.msk [vmem:[%s4893_s27 + $0x18] sm:$0xff] %vm480_vm0, %v3298_v41 }
 0xff4   : > { %v3296_v40 = vadd.f32 %v3441_v16, %v3281_v43  ;;  %v3284_v22 = vmul.f32 %v3440_v15, %v3269_v9 }
 0xff5   : > { %v4047_v12 = vpop.eup %4046 }
 0xff6   : > { %v4049_v52 = vpop.eup %4048  ;;  %3304 = vst.msk [vmem:[%s4893_s27 + $0x8] sm:$0xff] %vm480_vm0, %v3296_v40  ;;  %v3299_v30 = vadd.f32 %v3441_v16, %v3284_v22  ;;  %v3271_v42 = vmul.f32 %v4047_v12, %v4865_v56 }
 0xff7   : > { %v3270_v13 = vmul.f32 %v4049_v52, %v4867_v27 }
 0xff8   : > { %3307 = vst.msk [vmem:[%s4893_s27 + $0x20] sm:$0xff] %vm480_vm0, %v3299_v30  ;;  %v3286_v18 = vmul.f32 %v3440_v15, %v3271_v42 }
 0xff9   : > { %v4051_v38 = vpop.eup %4050  ;;  %v3285_v51 = vmul.f32 %v3440_v15, %v3270_v13 }
 0xffa   : > { %v3301_v20 = vadd.f32 %v3441_v16, %v3286_v18  ;;  %v3272_v32 = vmul.f32 %v4051_v38, %v4874_v34 }
 0xffb   : > { %v3300_v63 = vadd.f32 %v3441_v16, %v3285_v51 }
 0xffc   : > { %3309 = vst.msk [vmem:[%s4893_s27 + $0x30] sm:$0xff] %vm480_vm0, %v3301_v20  ;;  %v3287_v1 = vmul.f32 %v3440_v15, %v3272_v32 }
 0xffd   : > { %3308 = vst.msk [vmem:[%s4893_s27 + $0x28] sm:$0xff] %vm480_vm0, %v3300_v63 }
 0xffe   : > { %v3302_v48 = vadd.f32 %v3441_v16, %v3287_v1 }
0x1000   : > { %3310 = vst.msk [vmem:[%s4893_s27 + $0x38] sm:$0xff] %vm480_vm0, %v3302_v48 }
0x1001 PF: > { %s23_s25 = sadd.s32 1, %s4066_s25  }
0x1002   : > { %p20_p4 = scmp.ge.s32.totalorder %s23_s25, 4  }
0x1004   :  { %22 = sbr.rel (!%p20_p4) target bundleno = 1 (0x1), region = 102 }

</bundles_post_ra>
